<compile_context>
chip_gen: v6e
topology: v6e:2x2x1
jax: 0.10.0
libtpu: 0.0.40
codegen_flags: <defaults>
</compile_context>

<pallas_src>
import functools
import math

import jax
import jax.numpy as jnp
from jax.experimental import pallas as pl
from jax.experimental.pallas import tpu as pltpu


# bf16 MXU inputs + f32 accumulation. Flip to jnp.float32 for exact-f32 matmuls.
MATMUL_DTYPE = jnp.bfloat16

# Scoped-VMEM budget: > v5e's 16 MiB / v6e-v7x's 32 MiB defaults, < v7x's
# 64 MiB physical capacity (leaves headroom for compiler-internal scratch).
VMEM_LIMIT = 48 * 1024 * 1024


def _pick_tile(n, limit):
    """Largest power-of-two tile <= limit that evenly divides n (else n itself).

    Falling back to the full dimension keeps the (8,128) block constraint
    satisfied at small / odd sizes; at realistic sizes this returns large row
    tiles so the pipeline is double-buffered and both TCs get work.
    """
    if n <= limit:
        return n
    t = limit
    while t >= 8:
        if n % t == 0:
            return t
        t //= 2
    return n


# ----------------------------- Pallas kernels -----------------------------

def _erf(x):
    # Abramowitz & Stegun 7.1.26 rational approximation, |err| <= 1.5e-7.
    # exp() goes to the EUP slot; the polynomial stays on the VPU in f32.
    a1, a2, a3, a4, a5 = 0.254829592, -0.284496736, 1.421413741, -1.453152027, 1.061405429
    p = 0.3275911
    sgn = jnp.where(x >= 0.0, 1.0, -1.0)
    ax = jnp.abs(x)
    t = 1.0 / (1.0 + p * ax)
    poly = ((((a5 * t + a4) * t + a3) * t + a2) * t + a1) * t
    return sgn * (1.0 - poly * jnp.exp(-ax * ax))


def _gelu_exact(x):
    # Matches torch.nn.functional.gelu (default, erf-based) to ~1e-7.
    return 0.5 * x * (1.0 + _erf(x * (1.0 / math.sqrt(2.0))))


def _layer_norm(z, gamma, beta, eps):
    mu = jnp.mean(z, axis=-1, keepdims=True)
    zc = z - mu
    var = jnp.mean(zc * zc, axis=-1, keepdims=True)   # biased, as torch LayerNorm
    return zc * jax.lax.rsqrt(var + eps) * gamma + beta


def _mha_ln_kernel(xq_ref, xkv_ref, wq_ref, bq_ref, wk_ref, bk_ref,
                   wv_ref, bv_ref, wo_ref, bo_ref, bias_ref, mask_ref,
                   g_ref, beta_ref, out_ref, prob_ref, acc_ref, *, eps):
    """One (batch, head) grid step of multi-head attention.

    Per-head Q/K/V projection (1/sqrt(dh) pre-folded into wq/bq), scores +
    relative-position bias + additive mask, softmax, context, per-head output
    projection accumulated into a (Sq, d) f32 scratch across the head axis,
    and residual-add + LayerNorm as an epilogue on the last head.
    """
    h = pl.program_id(1)
    last_h = pl.num_programs(1) - 1

    xq_f32 = xq_ref[0]                                  # (Sq, d) f32 (residual)
    xq = xq_f32.astype(MATMUL_DTYPE)
    xkv = xkv_ref[0].astype(MATMUL_DTYPE)               # (Sk, d)

    # Per-head projections; weights are already bf16, biases f32.
    q = jnp.dot(xq, wq_ref[0], preferred_element_type=jnp.float32) + bq_ref[0]   # (Sq, dh)
    k = jnp.dot(xkv, wk_ref[0], preferred_element_type=jnp.float32) + bk_ref[0]  # (Sk, dh)
    v = jnp.dot(xkv, wv_ref[0], preferred_element_type=jnp.float32) + bv_ref[0]  # (Sk, dh)

    # scores = (Q*scale) @ K^T + rel-pos bias + additive pad/causal mask
    s = jax.lax.dot_general(q.astype(MATMUL_DTYPE), k.astype(MATMUL_DTYPE),
                            dimension_numbers=(((1,), (1,)), ((), ())),
                            preferred_element_type=jnp.float32)                  # (Sq, Sk)
    s = s + bias_ref[0] + mask_ref[0]

    # softmax in f32 (probs are a user-visible output)
    s = s - jnp.max(s, axis=-1, keepdims=True)
    e = jnp.exp(s)
    p = e / jnp.sum(e, axis=-1, keepdims=True)
    prob_ref[0, 0] = p

    ctx = jnp.dot(p.astype(MATMUL_DTYPE), v.astype(MATMUL_DTYPE),
                  preferred_element_type=jnp.float32)                            # (Sq, dh)
    part = jnp.dot(ctx.astype(MATMUL_DTYPE), wo_ref[0],
                   preferred_element_type=jnp.float32)                           # (Sq, d)

    @pl.when(h == 0)
    def _():
        acc_ref[...] = part

    @pl.when(h > 0)
    def _():
        acc_ref[...] = acc_ref[...] + part

    # epilogue on the last head: output bias + residual + LayerNorm
    @pl.when(h == last_h)
    def _():
        z = xq_f32 + acc_ref[...] + bo_ref[...]
        out_ref[0] = _layer_norm(z, g_ref[...], beta_ref[...], eps)


def multi_head_attention_ln(q_in, kv_in, mask_add, bucket, p, ln, cfg, eps):
    """Fused MHA + post-attention residual LayerNorm.

    q_in: (B, Sq, d) f32 (also the LN residual); kv_in: (B, Sk, d) f32.
    mask_add: (B, Sq, Sk) additive f32 mask (0 / -1e9).
    bucket: (Sq, Sk) int32 relative-position buckets (precomputed).
    Returns LN(q_in + attn_out) of shape (B, Sq, d) and probs (B, H, Sq, Sk).
    """
    bsz, sq, d = q_in.shape
    sk = kv_in.shape[1]
    h, dh = cfg["n_head"], cfg["d_head"]

    # per-module relative-position bias (small: H*Sq*Sk), gather in plain JAX
    bias = jnp.transpose(jnp.take(p["rel_emb"], bucket, axis=0), (2, 0, 1))  # (H, Sq, Sk)

    out, prob = pl.pallas_call(
        functools.partial(_mha_ln_kernel, eps=eps),
        grid=(bsz, h),
        in_specs=[
            pl.BlockSpec((1, sq, d), lambda b, hh: (b, 0, 0)),      # xq (stays resident over h)
            pl.BlockSpec((1, sk, d), lambda b, hh: (b, 0, 0)),      # xkv
            pl.BlockSpec((1, d, dh), lambda b, hh: (hh, 0, 0)),     # wq (per head)
            pl.BlockSpec((1, 1, dh), lambda b, hh: (hh, 0, 0)),     # bq
            pl.BlockSpec((1, d, dh), lambda b, hh: (hh, 0, 0)),     # wk
            pl.BlockSpec((1, 1, dh), lambda b, hh: (hh, 0, 0)),     # bk
            pl.BlockSpec((1, d, dh), lambda b, hh: (hh, 0, 0)),     # wv
            pl.BlockSpec((1, 1, dh), lambda b, hh: (hh, 0, 0)),     # bv
            pl.BlockSpec((1, dh, d), lambda b, hh: (hh, 0, 0)),     # wo (per-head rows)
            pl.BlockSpec((1, d), lambda b, hh: (0, 0)),             # bo
            pl.BlockSpec((1, sq, sk), lambda b, hh: (hh, 0, 0)),    # rel-pos bias
            pl.BlockSpec((1, sq, sk), lambda b, hh: (b, 0, 0)),     # additive mask
            pl.BlockSpec((1, d), lambda b, hh: (0, 0)),             # LN gamma
            pl.BlockSpec((1, d), lambda b, hh: (0, 0)),             # LN beta
        ],
        out_specs=[
            pl.BlockSpec((1, sq, d), lambda b, hh: (b, 0, 0)),          # LN(residual+attn)
            pl.BlockSpec((1, 1, sq, sk), lambda b, hh: (b, hh, 0, 0)),  # attn probs
        ],
        out_shape=[
            jax.ShapeDtypeStruct((bsz, sq, d), jnp.float32),
            jax.ShapeDtypeStruct((bsz, h, sq, sk), jnp.float32),
        ],
        scratch_shapes=[pltpu.VMEM((sq, d), jnp.float32)],
        compiler_params=pltpu.CompilerParams(
            dimension_semantics=("parallel", "arbitrary"),
            vmem_limit_bytes=VMEM_LIMIT),
    )(q_in, kv_in,
      p["wq"], p["bq"], p["wk"], p["bk"], p["wv"], p["bv"],
      p["wo"], p["bo"], bias, mask_add, ln["g"], ln["b"])
    return out, prob


def _ffn_ln_kernel(x_ref, w1_ref, b1_ref, w2_ref, b2_ref, g_ref, bt_ref,
                   o_ref, *, eps):
    """Position-wise FFN with fused residual-add + LayerNorm epilogue."""
    x = x_ref[...]                                                    # (tm, d) f32
    hid = jnp.dot(x.astype(MATMUL_DTYPE), w1_ref[...],
                  preferred_element_type=jnp.float32) + b1_ref[...]   # (tm, dff)
    hid = _gelu_exact(hid)                                            # f32 elementwise
    y = jnp.dot(hid.astype(MATMUL_DTYPE), w2_ref[...],
                preferred_element_type=jnp.float32) + b2_ref[...]     # (tm, d)
    o_ref[...] = _layer_norm(x + y, g_ref[...], bt_ref[...], eps)


def ffn_ln(x, fp, ln, eps):
    """LayerNorm(x + FFN(x)), row-tiled.

    Row tile capped at 256 so the (rows, d_ff) f32 gelu intermediate plus the
    bf16-resident w1/w2 stays well under the VMEM limit at realistic d_ff.
    """
    # TODO(synk): for very large d_ff add a dff grid axis ("arbitrary") with a
    # per-row-tile f32 accumulator instead of relying on the row-tile cap.
    bsz, seq, d = x.shape
    dff = fp["w1"].shape[1]
    m = bsz * seq
    tm = _pick_tile(m, 256)
    out = pl.pallas_call(
        functools.partial(_ffn_ln_kernel, eps=eps),
        grid=(m // tm,),
        in_specs=[pl.BlockSpec((tm, d), lambda i: (i, 0)),
                  pl.BlockSpec((d, dff), lambda i: (0, 0)),
                  pl.BlockSpec((1, dff), lambda i: (0, 0)),
                  pl.BlockSpec((dff, d), lambda i: (0, 0)),
                  pl.BlockSpec((1, d), lambda i: (0, 0)),
                  pl.BlockSpec((1, d), lambda i: (0, 0)),
                  pl.BlockSpec((1, d), lambda i: (0, 0))],
        out_specs=pl.BlockSpec((tm, d), lambda i: (i, 0)),
        out_shape=jax.ShapeDtypeStruct((m, d), jnp.float32),
        compiler_params=pltpu.CompilerParams(
            dimension_semantics=("parallel",),
            vmem_limit_bytes=VMEM_LIMIT),
    )(x.reshape(m, d), fp["w1"], fp["b1"], fp["w2"], fp["b2"], ln["g"], ln["b"])
    return out.reshape(bsz, seq, d)


def _lm_head_kernel(x_ref, e_ref, o_ref):
    # logits tile = x @ emb^T, contraction expressed directly (no emb.T copy,
    # no zero-bias add); embedding operand is pre-cast bf16, f32 accumulation.
    o_ref[...] = jax.lax.dot_general(
        x_ref[...].astype(MATMUL_DTYPE), e_ref[...],
        dimension_numbers=(((1,), (1,)), ((), ())),
        preferred_element_type=jnp.float32)


def lm_head(x, emb_bf16):
    """Tied LM projection (no bias): (B,S,d) x (nv,d) -> (B,S,nv)."""
    bsz, seq, d = x.shape
    nv = emb_bf16.shape[0]
    m = bsz * seq
    tm = _pick_tile(m, 512)
    tn = _pick_tile(nv, 2048)
    out = pl.pallas_call(
        _lm_head_kernel,
        grid=(m // tm, nv // tn),
        in_specs=[pl.BlockSpec((tm, d), lambda i, j: (i, 0)),
                  pl.BlockSpec((tn, d), lambda i, j: (j, 0))],
        out_specs=pl.BlockSpec((tm, tn), lambda i, j: (i, j)),
        out_shape=jax.ShapeDtypeStruct((m, nv), jnp.float32),
        compiler_params=pltpu.CompilerParams(
            dimension_semantics=("parallel", "parallel"),
            vmem_limit_bytes=VMEM_LIMIT),
    )(x.reshape(m, d), emb_bf16)
    return out.reshape(bsz, seq, nv)


# ------------------------------ glue (plain JAX) ------------------------------

def relative_position_bucket(relative_position, num_buckets=32, max_distance=128):
    # bidirectional=False path (the only one exercised by the reference module).
    n = jnp.maximum(-relative_position, 0)
    max_exact = num_buckets // 2
    is_small = n < max_exact
    n_safe = jnp.maximum(n, 1).astype(jnp.float32)   # avoid log(0) in the discarded branch
    val_if_large = max_exact + (
        jnp.log(n_safe / max_exact) / math.log(max_distance / max_exact)
        * (num_buckets - max_exact)).astype(jnp.int32)
    val_if_large = jnp.minimum(val_if_large, num_buckets - 1)
    return jnp.where(is_small, n, val_if_large)


def make_bucket(qlen, klen):
    ctx_pos = jnp.arange(qlen, dtype=jnp.int32)[:, None]
    mem_pos = jnp.arange(klen, dtype=jnp.int32)[None, :]
    return relative_position_bucket(mem_pos - ctx_pos)      # (qlen, klen) int32


def get_attn_pad_mask(seq_q, seq_k, i_pad):
    bsz, lq = seq_q.shape
    lk = seq_k.shape[1]
    pad = (seq_k == i_pad)[:, None, :]
    return jnp.broadcast_to(pad, (bsz, lq, lk))


def get_attn_dec_mask(dec_inputs, i_pad):
    pad = get_attn_pad_mask(dec_inputs, dec_inputs, i_pad).astype(jnp.int32)
    l = dec_inputs.shape[1]
    ahead = jnp.triu(jnp.ones((l, l), jnp.int32), k=1)[None, :, :]
    return (pad + ahead) > 0


def mask_to_additive(mask_bool):
    # compact (B, Sq, Sk) additive f32 mask (one per mask type per forward)
    return jnp.where(mask_bool, -1000000000.0, 0.0).astype(jnp.float32)


def t5_forward(params, cfg, enc_inputs, dec_inputs):
    eps = cfg["layer_norm_epsilon"]
    emb = params["embedding"]
    enc_embd = jnp.take(emb, enc_inputs, axis=0)
    dec_embd = jnp.take(emb, dec_inputs, axis=0)

    s_enc = enc_inputs.shape[1]
    s_dec = dec_inputs.shape[1]

    # masks -> additive f32, computed once and reused by every layer
    enc_self_mask = mask_to_additive(get_attn_pad_mask(enc_inputs, enc_inputs, cfg["i_pad"]))
    dec_self_mask = mask_to_additive(get_attn_dec_mask(dec_inputs, cfg["i_pad"]))
    dec_ende_mask = mask_to_additive(get_attn_pad_mask(dec_inputs, enc_inputs, cfg["i_pad"]))

    # relative-position buckets depend only on (Sq, Sk): compute once, reuse
    bucket_ee = make_bucket(s_enc, s_enc)
    bucket_dd = make_bucket(s_dec, s_dec)
    bucket_de = make_bucket(s_dec, s_enc)

    # ---- encoder ----
    enc_out = enc_embd
    enc_self_attn_probs = []
    for lp in params["enc_layers"]:
        att, prob = multi_head_attention_ln(enc_out, enc_out, enc_self_mask,
                                            bucket_ee, lp["self_attn"], lp["ln1"],
                                            cfg, eps)
        enc_out = ffn_ln(att, lp["ffn"], lp["ln2"], eps)
        enc_self_attn_probs.append(prob)

    # ---- decoder ----
    dec_out = dec_embd
    dec_self_attn_probs, dec_enc_attn_probs = [], []
    for lp in params["dec_layers"]:
        sa, sp = multi_head_attention_ln(dec_out, dec_out, dec_self_mask,
                                         bucket_dd, lp["self_attn"], lp["ln1"],
                                         cfg, eps)
        ca, cp = multi_head_attention_ln(sa, enc_out, dec_ende_mask,
                                         bucket_de, lp["cross_attn"], lp["ln2"],
                                         cfg, eps)
        dec_out = ffn_ln(ca, lp["ffn"], lp["ln3"], eps)
        dec_self_attn_probs.append(sp)
        dec_enc_attn_probs.append(cp)

    # ---- tied LM projection (no bias, bf16 embedding operand) ----
    logits = lm_head(dec_out, params["embedding_bf16"])
    return logits, enc_self_attn_probs, dec_self_attn_probs, dec_enc_attn_probs


# ------------------------------ parameter init ------------------------------

def init_params(key, cfg):
    """Raw (PyTorch-layout) parameters: Linear weights stored as (in, out)."""
    d, h, dh = cfg["d_hidn"], cfg["n_head"], cfg["d_head"]
    dff, nv = cfg["d_ff"], cfg["n_vocab"]

    keys = iter(jax.random.split(key, 256))

    def nrm(shape, scale=0.02):
        return scale * jax.random.normal(next(keys), shape, dtype=jnp.float32)

    def mha_params():
        return dict(
            wq=nrm((d, h * dh)), bq=nrm((h * dh,)),
            wk=nrm((d, h * dh)), bk=nrm((h * dh,)),
            wv=nrm((d, h * dh)), bv=nrm((h * dh,)),
            wo=nrm((h * dh, d)), bo=nrm((d,)),
            rel_emb=nrm((32, h)),                 # nn.Embedding(32, n_head)
        )

    def ln_params():
        return dict(g=jnp.ones((d,), jnp.float32), b=jnp.zeros((d,), jnp.float32))

    def ffn_params():
        return dict(w1=nrm((d, dff)), b1=nrm((dff,)),
                    w2=nrm((dff, d)), b2=nrm((d,)))

    enc_layers = [dict(self_attn=mha_params(), ln1=ln_params(),
                       ffn=ffn_params(), ln2=ln_params())
                  for _ in range(cfg["n_layer"])]
    dec_layers = [dict(self_attn=mha_params(), ln1=ln_params(),
                       cross_attn=mha_params(), ln2=ln_params(),
                       ffn=ffn_params(), ln3=ln_params())
                  for _ in range(cfg["n_layer"])]
    embedding = nrm((nv, d))
    return dict(embedding=embedding, enc_layers=enc_layers, dec_layers=dec_layers)


def prepare_params(params, cfg):
    """One-time param prep: fold 1/sqrt(dh) into Q, reshape weights into
    per-head slabs (H, d, dh)/(H, dh, d), and pre-cast all matmul weights to
    bf16 (halves weight DMA + VMEM residency). Biases / LN params stay f32."""
    d, h, dh = cfg["d_hidn"], cfg["n_head"], cfg["d_head"]
    scale = 1.0 / (dh ** 0.5)

    def per_head_w(w):           # (d, H*dh) -> (H, d, dh) bf16
        return jnp.transpose(w.reshape(d, h, dh), (1, 0, 2)).astype(MATMUL_DTYPE)

    def per_head_b(b):           # (H*dh,) -> (H, 1, dh) f32
        return b.reshape(h, 1, dh)

    def prep_attn(p):
        return dict(
            wq=per_head_w(p["wq"] * scale), bq=per_head_b(p["bq"] * scale),
            wk=per_head_w(p["wk"]), bk=per_head_b(p["bk"]),
            wv=per_head_w(p["wv"]), bv=per_head_b(p["bv"]),
            wo=p["wo"].reshape(h, dh, d).astype(MATMUL_DTYPE),
            bo=p["bo"].reshape(1, d),
            rel_emb=p["rel_emb"])

    def prep_ln(p):
        return dict(g=p["g"].reshape(1, d), b=p["b"].reshape(1, d))

    def prep_ffn(p):
        dff = p["w1"].shape[1]
        return dict(w1=p["w1"].astype(MATMUL_DTYPE), b1=p["b1"].reshape(1, dff),
                    w2=p["w2"].astype(MATMUL_DTYPE), b2=p["b2"].reshape(1, d))

    enc_layers = [dict(self_attn=prep_attn(lp["self_attn"]), ln1=prep_ln(lp["ln1"]),
                       ffn=prep_ffn(lp["ffn"]), ln2=prep_ln(lp["ln2"]))
                  for lp in params["enc_layers"]]
    dec_layers = [dict(self_attn=prep_attn(lp["self_attn"]), ln1=prep_ln(lp["ln1"]),
                       cross_attn=prep_attn(lp["cross_attn"]), ln2=prep_ln(lp["ln2"]),
                       ffn=prep_ffn(lp["ffn"]), ln3=prep_ln(lp["ln3"]))
                  for lp in params["dec_layers"]]
    return dict(embedding=params["embedding"],                       # f32 for lookups
                embedding_bf16=params["embedding"].astype(MATMUL_DTYPE),  # LM head operand
                enc_layers=enc_layers, dec_layers=dec_layers)


# ---------------------------------- main ----------------------------------

if __name__ == "__main__":
    cfg = dict(n_vocab=64, d_hidn=32, n_head=4, d_head=8, d_ff=64,
               n_layer=2, dropout=0.0, layer_norm_epsilon=1e-6, i_pad=0)

    key = jax.random.PRNGKey(0)
    pkey, ekey, dkey = jax.random.split(key, 3)
    params = prepare_params(init_params(pkey, cfg), cfg)

    B, S_ENC, S_DEC = 2, 8, 8
    enc_inputs = jax.random.randint(ekey, (B, S_ENC), 1, cfg["n_vocab"], dtype=jnp.int32)
    dec_inputs = jax.random.randint(dkey, (B, S_DEC), 1, cfg["n_vocab"], dtype=jnp.int32)
    # introduce pad tokens to exercise the pad masks
    enc_inputs = enc_inputs.at[:, -2:].set(cfg["i_pad"])
    dec_inputs = dec_inputs.at[:, -1:].set(cfg["i_pad"])

    fwd = jax.jit(lambda p, e, d: t5_forward(p, cfg, e, d))
    logits, enc_probs, dec_self_probs, dec_enc_probs = fwd(params, enc_inputs, dec_inputs)

    jax.block_until_ready(logits)
    for prob in enc_probs + dec_self_probs + dec_enc_probs:
        jax.block_until_ready(prob)

    print("KERNEL_OK")
</pallas_src>

<mosaic_0001>
module attributes {stable_mosaic.version = 11 : i64} {
  func.func @_ffn_ln_kernel(%arg0: i32, %arg1: memref<16x32xf32, #tpu.memory_space<vmem>>, %arg2: memref<32x64xbf16, #tpu.memory_space<vmem>>, %arg3: memref<1x64xf32, #tpu.memory_space<vmem>>, %arg4: memref<64x32xbf16, #tpu.memory_space<vmem>>, %arg5: memref<1x32xf32, #tpu.memory_space<vmem>>, %arg6: memref<1x32xf32, #tpu.memory_space<vmem>>, %arg7: memref<1x32xf32, #tpu.memory_space<vmem>>, %arg8: memref<16x32xf32, #tpu.memory_space<vmem>>) attributes {dimension_semantics = [#tpu.dimension_semantics<parallel>], iteration_bounds = array<i64: 1>, scalar_prefetch = 0 : i64, scratch_operands = 0 : i64, tpu.core_type = #tpu.core_type<tc>, window_params = [{transform_indices = @transform_0, window_bounds = array<i64: 16, 32>}, {pipeline_mode = #tpu.pipeline_mode<synchronous>, transform_indices = @transform_1, window_bounds = array<i64: 32, 64>}, {pipeline_mode = #tpu.pipeline_mode<synchronous>, transform_indices = @transform_2, window_bounds = array<i64: 1, 64>}, {pipeline_mode = #tpu.pipeline_mode<synchronous>, transform_indices = @transform_3, window_bounds = array<i64: 64, 32>}, {pipeline_mode = #tpu.pipeline_mode<synchronous>, transform_indices = @transform_4, window_bounds = array<i64: 1, 32>}, {pipeline_mode = #tpu.pipeline_mode<synchronous>, transform_indices = @transform_5, window_bounds = array<i64: 1, 32>}, {pipeline_mode = #tpu.pipeline_mode<synchronous>, transform_indices = @transform_6, window_bounds = array<i64: 1, 32>}, {transform_indices = @transform_7, window_bounds = array<i64: 16, 32>}]} {
    %c0 = arith.constant 0 : index
    %c0_0 = arith.constant 0 : index
    %0 = vector.load %arg1[%c0, %c0_0] : memref<16x32xf32, #tpu.memory_space<vmem>>, vector<16x32xf32>
    %1 = arith.truncf %0 : vector<16x32xf32> to vector<16x32xbf16>
    %c0_1 = arith.constant 0 : index
    %c0_2 = arith.constant 0 : index
    %2 = vector.load %arg2[%c0_1, %c0_2] : memref<32x64xbf16, #tpu.memory_space<vmem>>, vector<32x64xbf16>
    %cst = arith.constant dense<0.000000e+00> : vector<16x64xf32>
    %3 = tpu.matmul %1, %2, %cst {dimension_numbers = #tpu.dot_dimension_numbers<[1], [0], [0], [1], [0, 0, 1, 1], [], []>} : vector<16x32xbf16>, vector<32x64xbf16>, vector<16x64xf32> -> vector<16x64xf32>
    %c0_3 = arith.constant 0 : index
    %c0_4 = arith.constant 0 : index
    %4 = vector.load %arg3[%c0_3, %c0_4] : memref<1x64xf32, #tpu.memory_space<vmem>>, vector<1x64xf32>
    %5 = vector.broadcast %4 : vector<1x64xf32> to vector<16x64xf32>
    %6 = arith.addf %3, %5 : vector<16x64xf32>
    %cst_5 = arith.constant 5.000000e-01 : f32
    %7 = vector.broadcast %cst_5 : f32 to vector<16x64xf32>
    %8 = arith.mulf %7, %6 : vector<16x64xf32>
    %cst_6 = arith.constant 0.707106769 : f32
    %9 = vector.broadcast %cst_6 : f32 to vector<16x64xf32>
    %10 = arith.mulf %6, %9 : vector<16x64xf32>
    %cst_7 = arith.constant 0.000000e+00 : f32
    %11 = vector.broadcast %cst_7 : f32 to vector<16x64xf32>
    %12 = arith.cmpf oge, %10, %11 : vector<16x64xf32>
    %cst_8 = arith.constant 1.000000e+00 : f32
    %cst_9 = arith.constant -1.000000e+00 : f32
    %13 = vector.broadcast %cst_8 : f32 to vector<16x64xf32>
    %14 = vector.broadcast %cst_9 : f32 to vector<16x64xf32>
    %15 = arith.select %12, %13, %14 : vector<16x64xi1>, vector<16x64xf32>
    %16 = math.absf %10 : vector<16x64xf32>
    %cst_10 = arith.constant 0.327591091 : f32
    %17 = vector.broadcast %cst_10 : f32 to vector<16x64xf32>
    %18 = arith.mulf %17, %16 : vector<16x64xf32>
    %cst_11 = arith.constant 1.000000e+00 : f32
    %19 = vector.broadcast %cst_11 : f32 to vector<16x64xf32>
    %20 = arith.addf %19, %18 : vector<16x64xf32>
    %cst_12 = arith.constant 1.000000e+00 : f32
    %21 = vector.broadcast %cst_12 : f32 to vector<16x64xf32>
    %22 = arith.divf %21, %20 : vector<16x64xf32>
    %cst_13 = arith.constant 1.06140542 : f32
    %23 = vector.broadcast %cst_13 : f32 to vector<16x64xf32>
    %24 = arith.mulf %23, %22 : vector<16x64xf32>
    %cst_14 = arith.constant -1.45315206 : f32
    %25 = vector.broadcast %cst_14 : f32 to vector<16x64xf32>
    %26 = arith.addf %24, %25 : vector<16x64xf32>
    %27 = arith.mulf %26, %22 : vector<16x64xf32>
    %cst_15 = arith.constant 1.42141378 : f32
    %28 = vector.broadcast %cst_15 : f32 to vector<16x64xf32>
    %29 = arith.addf %27, %28 : vector<16x64xf32>
    %30 = arith.mulf %29, %22 : vector<16x64xf32>
    %cst_16 = arith.constant -0.284496725 : f32
    %31 = vector.broadcast %cst_16 : f32 to vector<16x64xf32>
    %32 = arith.addf %30, %31 : vector<16x64xf32>
    %33 = arith.mulf %32, %22 : vector<16x64xf32>
    %cst_17 = arith.constant 0.254829586 : f32
    %34 = vector.broadcast %cst_17 : f32 to vector<16x64xf32>
    %35 = arith.addf %33, %34 : vector<16x64xf32>
    %36 = arith.mulf %35, %22 : vector<16x64xf32>
    %cst_18 = arith.constant 0.000000e+00 : f32
    %37 = vector.broadcast %cst_18 : f32 to vector<16x64xf32>
    %38 = arith.subf %37, %16 : vector<16x64xf32>
    %39 = arith.mulf %38, %16 : vector<16x64xf32>
    %40 = math.exp %39 : vector<16x64xf32>
    %41 = arith.mulf %36, %40 : vector<16x64xf32>
    %cst_19 = arith.constant 1.000000e+00 : f32
    %42 = vector.broadcast %cst_19 : f32 to vector<16x64xf32>
    %43 = arith.subf %42, %41 : vector<16x64xf32>
    %44 = arith.mulf %15, %43 : vector<16x64xf32>
    %cst_20 = arith.constant 1.000000e+00 : f32
    %45 = vector.broadcast %cst_20 : f32 to vector<16x64xf32>
    %46 = arith.addf %45, %44 : vector<16x64xf32>
    %47 = arith.mulf %8, %46 : vector<16x64xf32>
    %48 = arith.truncf %47 : vector<16x64xf32> to vector<16x64xbf16>
    %c0_21 = arith.constant 0 : index
    %c0_22 = arith.constant 0 : index
    %49 = vector.load %arg4[%c0_21, %c0_22] : memref<64x32xbf16, #tpu.memory_space<vmem>>, vector<64x32xbf16>
    %cst_23 = arith.constant dense<0.000000e+00> : vector<16x32xf32>
    %50 = tpu.matmul %48, %49, %cst_23 {dimension_numbers = #tpu.dot_dimension_numbers<[1], [0], [0], [1], [0, 0, 1, 1], [], []>} : vector<16x64xbf16>, vector<64x32xbf16>, vector<16x32xf32> -> vector<16x32xf32>
    %c0_24 = arith.constant 0 : index
    %c0_25 = arith.constant 0 : index
    %51 = vector.load %arg5[%c0_24, %c0_25] : memref<1x32xf32, #tpu.memory_space<vmem>>, vector<1x32xf32>
    %52 = vector.broadcast %51 : vector<1x32xf32> to vector<16x32xf32>
    %53 = arith.addf %50, %52 : vector<16x32xf32>
    %54 = arith.addf %0, %53 : vector<16x32xf32>
    %c0_26 = arith.constant 0 : index
    %c0_27 = arith.constant 0 : index
    %55 = vector.load %arg6[%c0_26, %c0_27] : memref<1x32xf32, #tpu.memory_space<vmem>>, vector<1x32xf32>
    %c0_28 = arith.constant 0 : index
    %c0_29 = arith.constant 0 : index
    %56 = vector.load %arg7[%c0_28, %c0_29] : memref<1x32xf32, #tpu.memory_space<vmem>>, vector<1x32xf32>
    %cst_30 = arith.constant dense<0.000000e+00> : vector<16xf32>
    %57 = vector.multi_reduction <add>, %54, %cst_30 [1] : vector<16x32xf32> to vector<16xf32>
    %58 = vector.shape_cast %57 : vector<16xf32> to vector<16x1xf32>
    %cst_31 = arith.constant 3.200000e+01 : f32
    %59 = vector.broadcast %cst_31 : f32 to vector<16x1xf32>
    %60 = arith.divf %58, %59 : vector<16x1xf32>
    %61 = vector.broadcast %60 : vector<16x1xf32> to vector<16x32xf32>
    %62 = arith.subf %54, %61 : vector<16x32xf32>
    %63 = arith.mulf %62, %62 : vector<16x32xf32>
    %cst_32 = arith.constant dense<0.000000e+00> : vector<16xf32>
    %64 = vector.multi_reduction <add>, %63, %cst_32 [1] : vector<16x32xf32> to vector<16xf32>
    %65 = vector.shape_cast %64 : vector<16xf32> to vector<16x1xf32>
    %cst_33 = arith.constant 3.200000e+01 : f32
    %66 = vector.broadcast %cst_33 : f32 to vector<16x1xf32>
    %67 = arith.divf %65, %66 : vector<16x1xf32>
    %cst_34 = arith.constant 9.99999997E-7 : f32
    %68 = vector.broadcast %cst_34 : f32 to vector<16x1xf32>
    %69 = arith.addf %67, %68 : vector<16x1xf32>
    %70 = math.rsqrt %69 : vector<16x1xf32>
    %71 = vector.broadcast %70 : vector<16x1xf32> to vector<16x32xf32>
    %72 = arith.mulf %62, %71 : vector<16x32xf32>
    %73 = vector.broadcast %55 : vector<1x32xf32> to vector<16x32xf32>
    %74 = arith.mulf %72, %73 : vector<16x32xf32>
    %75 = vector.broadcast %56 : vector<1x32xf32> to vector<16x32xf32>
    %76 = arith.addf %74, %75 : vector<16x32xf32>
    %c0_35 = arith.constant 0 : index
    %c0_36 = arith.constant 0 : index
    %77 = vector.load %arg8[%c0_35, %c0_36] : memref<16x32xf32, #tpu.memory_space<vmem>>, vector<16x32xf32>
    tpu.vector_store %arg8[%c0_35, %c0_36], %76 {strides = array<i32>} : memref<16x32xf32, #tpu.memory_space<vmem>>, vector<16x32xf32>,
    return
  }
  func.func @transform_0(%arg0: i32) -> (i32, i32) {
    %c0_i32 = arith.constant 0 : i32
    %c0_i32_0 = arith.constant 0 : i32
    return %arg0, %c0_i32 : i32, i32
  }
  func.func @transform_1(%arg0: i32) -> (i32, i32) {
    %c0_i32 = arith.constant 0 : i32
    %c0_i32_0 = arith.constant 0 : i32
    %c0_i32_1 = arith.constant 0 : i32
    return %c0_i32, %c0_i32_0 : i32, i32
  }
  func.func @transform_2(%arg0: i32) -> (i32, i32) {
    %c0_i32 = arith.constant 0 : i32
    %c0_i32_0 = arith.constant 0 : i32
    %c0_i32_1 = arith.constant 0 : i32
    return %c0_i32, %c0_i32_0 : i32, i32
  }
  func.func @transform_3(%arg0: i32) -> (i32, i32) {
    %c0_i32 = arith.constant 0 : i32
    %c0_i32_0 = arith.constant 0 : i32
    %c0_i32_1 = arith.constant 0 : i32
    return %c0_i32, %c0_i32_0 : i32, i32
  }
  func.func @transform_4(%arg0: i32) -> (i32, i32) {
    %c0_i32 = arith.constant 0 : i32
    %c0_i32_0 = arith.constant 0 : i32
    %c0_i32_1 = arith.constant 0 : i32
    return %c0_i32, %c0_i32_0 : i32, i32
  }
  func.func @transform_5(%arg0: i32) -> (i32, i32) {
    %c0_i32 = arith.constant 0 : i32
    %c0_i32_0 = arith.constant 0 : i32
    %c0_i32_1 = arith.constant 0 : i32
    return %c0_i32, %c0_i32_0 : i32, i32
  }
  func.func @transform_6(%arg0: i32) -> (i32, i32) {
    %c0_i32 = arith.constant 0 : i32
    %c0_i32_0 = arith.constant 0 : i32
    %c0_i32_1 = arith.constant 0 : i32
    return %c0_i32, %c0_i32_0 : i32, i32
  }
  func.func @transform_7(%arg0: i32) -> (i32, i32) {
    %c0_i32 = arith.constant 0 : i32
    %c0_i32_0 = arith.constant 0 : i32
    return %arg0, %c0_i32 : i32, i32
  }
}

module attributes {stable_mosaic.version = 11 : i64} {
  func.func @_mha_ln_kernel(%arg0: i32, %arg1: i32, %arg2: memref<1x8x32xf32, #tpu.memory_space<vmem>>, %arg3: memref<1x8x32xf32, #tpu.memory_space<vmem>>, %arg4: memref<1x32x8xbf16, #tpu.memory_space<vmem>>, %arg5: memref<1x1x8xf32, #tpu.memory_space<vmem>>, %arg6: memref<1x32x8xbf16, #tpu.memory_space<vmem>>, %arg7: memref<1x1x8xf32, #tpu.memory_space<vmem>>, %arg8: memref<1x32x8xbf16, #tpu.memory_space<vmem>>, %arg9: memref<1x1x8xf32, #tpu.memory_space<vmem>>, %arg10: memref<1x8x32xbf16, #tpu.memory_space<vmem>>, %arg11: memref<1x32xf32, #tpu.memory_space<vmem>>, %arg12: memref<1x8x8xf32, #tpu.memory_space<vmem>>, %arg13: memref<1x8x8xf32, #tpu.memory_space<vmem>>, %arg14: memref<1x32xf32, #tpu.memory_space<vmem>>, %arg15: memref<1x32xf32, #tpu.memory_space<vmem>>, %arg16: memref<1x8x32xf32, #tpu.memory_space<vmem>>, %arg17: memref<1x1x8x8xf32, #tpu.memory_space<vmem>>, %arg18: memref<8x32xf32, #tpu.memory_space<vmem>>) attributes {dimension_semantics = [#tpu.dimension_semantics<parallel>, #tpu.dimension_semantics<arbitrary>], iteration_bounds = array<i64: 2, 4>, scalar_prefetch = 0 : i64, scratch_operands = 1 : i64, tpu.core_type = #tpu.core_type<tc>, window_params = [{transform_indices = @transform_0, window_bounds = array<i64: 1, 8, 32>}, {transform_indices = @transform_1, window_bounds = array<i64: 1, 8, 32>}, {transform_indices = @transform_2, window_bounds = array<i64: 1, 32, 8>}, {transform_indices = @transform_3, window_bounds = array<i64: 1, 1, 8>}, {transform_indices = @transform_4, window_bounds = array<i64: 1, 32, 8>}, {transform_indices = @transform_5, window_bounds = array<i64: 1, 1, 8>}, {transform_indices = @transform_6, window_bounds = array<i64: 1, 32, 8>}, {transform_indices = @transform_7, window_bounds = array<i64: 1, 1, 8>}, {transform_indices = @transform_8, window_bounds = array<i64: 1, 8, 32>}, {pipeline_mode = #tpu.pipeline_mode<synchronous>, transform_indices = @transform_9, window_bounds = array<i64: 1, 32>}, {transform_indices = @transform_10, window_bounds = array<i64: 1, 8, 8>}, {transform_indices = @transform_11, window_bounds = array<i64: 1, 8, 8>}, {pipeline_mode = #tpu.pipeline_mode<synchronous>, transform_indices = @transform_12, window_bounds = array<i64: 1, 32>}, {pipeline_mode = #tpu.pipeline_mode<synchronous>, transform_indices = @transform_13, window_bounds = array<i64: 1, 32>}, {transform_indices = @transform_14, window_bounds = array<i64: 1, 8, 32>}, {transform_indices = @transform_15, window_bounds = array<i64: 1, 1, 8, 8>}]} {
    %c0 = arith.constant 0 : index
    %c0_0 = arith.constant 0 : index
    %c0_1 = arith.constant 0 : index
    %0 = vector.load %arg2[%c0, %c0_0, %c0_1] : memref<1x8x32xf32, #tpu.memory_space<vmem>>, vector<1x8x32xf32>
    %1 = vector.shape_cast %0 : vector<1x8x32xf32> to vector<8x32xf32>
    %2 = arith.truncf %1 : vector<8x32xf32> to vector<8x32xbf16>
    %c0_2 = arith.constant 0 : index
    %c0_3 = arith.constant 0 : index
    %c0_4 = arith.constant 0 : index
    %3 = vector.load %arg3[%c0_2, %c0_3, %c0_4] : memref<1x8x32xf32, #tpu.memory_space<vmem>>, vector<1x8x32xf32>
    %4 = vector.shape_cast %3 : vector<1x8x32xf32> to vector<8x32xf32>
    %5 = arith.truncf %4 : vector<8x32xf32> to vector<8x32xbf16>
    %c0_5 = arith.constant 0 : index
    %c0_6 = arith.constant 0 : index
    %c0_7 = arith.constant 0 : index
    %6 = vector.load %arg4[%c0_5, %c0_6, %c0_7] : memref<1x32x8xbf16, #tpu.memory_space<vmem>>, vector<1x32x8xbf16>
    %7 = vector.shape_cast %6 : vector<1x32x8xbf16> to vector<32x8xbf16>
    %cst = arith.constant dense<0.000000e+00> : vector<8x8xf32>
    %8 = tpu.matmul %2, %7, %cst {dimension_numbers = #tpu.dot_dimension_numbers<[1], [0], [0], [1], [0, 0, 1, 1], [], []>} : vector<8x32xbf16>, vector<32x8xbf16>, vector<8x8xf32> -> vector<8x8xf32>
    %c0_8 = arith.constant 0 : index
    %c0_9 = arith.constant 0 : index
    %c0_10 = arith.constant 0 : index
    %9 = vector.load %arg5[%c0_8, %c0_9, %c0_10] : memref<1x1x8xf32, #tpu.memory_space<vmem>>, vector<1x1x8xf32>
    %10 = vector.shape_cast %9 : vector<1x1x8xf32> to vector<1x8xf32>
    %11 = vector.broadcast %10 : vector<1x8xf32> to vector<8x8xf32>
    %12 = arith.addf %8, %11 : vector<8x8xf32>
    %c0_11 = arith.constant 0 : index
    %c0_12 = arith.constant 0 : index
    %c0_13 = arith.constant 0 : index
    %13 = vector.load %arg6[%c0_11, %c0_12, %c0_13] : memref<1x32x8xbf16, #tpu.memory_space<vmem>>, vector<1x32x8xbf16>
    %14 = vector.shape_cast %13 : vector<1x32x8xbf16> to vector<32x8xbf16>
    %cst_14 = arith.constant dense<0.000000e+00> : vector<8x8xf32>
    %15 = tpu.matmul %5, %14, %cst_14 {dimension_numbers = #tpu.dot_dimension_numbers<[1], [0], [0], [1], [0, 0, 1, 1], [], []>} : vector<8x32xbf16>, vector<32x8xbf16>, vector<8x8xf32> -> vector<8x8xf32>
    %c0_15 = arith.constant 0 : index
    %c0_16 = arith.constant 0 : index
    %c0_17 = arith.constant 0 : index
    %16 = vector.load %arg7[%c0_15, %c0_16, %c0_17] : memref<1x1x8xf32, #tpu.memory_space<vmem>>, vector<1x1x8xf32>
    %17 = vector.shape_cast %16 : vector<1x1x8xf32> to vector<1x8xf32>
    %18 = vector.broadcast %17 : vector<1x8xf32> to vector<8x8xf32>
    %19 = arith.addf %15, %18 : vector<8x8xf32>
    %c0_18 = arith.constant 0 : index
    %c0_19 = arith.constant 0 : index
    %c0_20 = arith.constant 0 : index
    %20 = vector.load %arg8[%c0_18, %c0_19, %c0_20] : memref<1x32x8xbf16, #tpu.memory_space<vmem>>, vector<1x32x8xbf16>
    %21 = vector.shape_cast %20 : vector<1x32x8xbf16> to vector<32x8xbf16>
    %cst_21 = arith.constant dense<0.000000e+00> : vector<8x8xf32>
    %22 = tpu.matmul %5, %21, %cst_21 {dimension_numbers = #tpu.dot_dimension_numbers<[1], [0], [0], [1], [0, 0, 1, 1], [], []>} : vector<8x32xbf16>, vector<32x8xbf16>, vector<8x8xf32> -> vector<8x8xf32>
    %c0_22 = arith.constant 0 : index
    %c0_23 = arith.constant 0 : index
    %c0_24 = arith.constant 0 : index
    %23 = vector.load %arg9[%c0_22, %c0_23, %c0_24] : memref<1x1x8xf32, #tpu.memory_space<vmem>>, vector<1x1x8xf32>
    %24 = vector.shape_cast %23 : vector<1x1x8xf32> to vector<1x8xf32>
    %25 = vector.broadcast %24 : vector<1x8xf32> to vector<8x8xf32>
    %26 = arith.addf %22, %25 : vector<8x8xf32>
    %27 = arith.truncf %12 : vector<8x8xf32> to vector<8x8xbf16>
    %28 = arith.truncf %19 : vector<8x8xf32> to vector<8x8xbf16>
    %cst_25 = arith.constant dense<0.000000e+00> : vector<8x8xf32>
    %29 = tpu.matmul %27, %28, %cst_25 {dimension_numbers = #tpu.dot_dimension_numbers<[1], [1], [0], [0], [0, 0, 1, 0], [], []>} : vector<8x8xbf16>, vector<8x8xbf16>, vector<8x8xf32> -> vector<8x8xf32>
    %c0_26 = arith.constant 0 : index
    %c0_27 = arith.constant 0 : index
    %c0_28 = arith.constant 0 : index
    %30 = vector.load %arg12[%c0_26, %c0_27, %c0_28] : memref<1x8x8xf32, #tpu.memory_space<vmem>>, vector<1x8x8xf32>
    %31 = vector.shape_cast %30 : vector<1x8x8xf32> to vector<8x8xf32>
    %32 = arith.addf %29, %31 : vector<8x8xf32>
    %c0_29 = arith.constant 0 : index
    %c0_30 = arith.constant 0 : index
    %c0_31 = arith.constant 0 : index
    %33 = vector.load %arg13[%c0_29, %c0_30, %c0_31] : memref<1x8x8xf32, #tpu.memory_space<vmem>>, vector<1x8x8xf32>
    %34 = vector.shape_cast %33 : vector<1x8x8xf32> to vector<8x8xf32>
    %35 = arith.addf %32, %34 : vector<8x8xf32>
    %cst_32 = arith.constant dense<0xFF800000> : vector<8xf32>
    %36 = vector.multi_reduction <maximumf>, %35, %cst_32 [1] : vector<8x8xf32> to vector<8xf32>
    %37 = vector.shape_cast %36 : vector<8xf32> to vector<8x1xf32>
    %38 = vector.broadcast %37 : vector<8x1xf32> to vector<8x8xf32>
    %39 = arith.subf %35, %38 : vector<8x8xf32>
    %40 = math.exp %39 : vector<8x8xf32>
    %cst_33 = arith.constant dense<0.000000e+00> : vector<8xf32>
    %41 = vector.multi_reduction <add>, %40, %cst_33 [1] : vector<8x8xf32> to vector<8xf32>
    %42 = vector.shape_cast %41 : vector<8xf32> to vector<8x1xf32>
    %43 = vector.broadcast %42 : vector<8x1xf32> to vector<8x8xf32>
    %44 = arith.divf %40, %43 : vector<8x8xf32>
    %c0_34 = arith.constant 0 : index
    %c0_35 = arith.constant 0 : index
    %c0_36 = arith.constant 0 : index
    %c0_37 = arith.constant 0 : index
    %45 = vector.load %arg17[%c0_34, %c0_35, %c0_36, %c0_37] : memref<1x1x8x8xf32, #tpu.memory_space<vmem>>, vector<1x1x8x8xf32>
    %46 = vector.shape_cast %45 : vector<1x1x8x8xf32> to vector<8x8xf32>
    %47 = vector.shape_cast %44 : vector<8x8xf32> to vector<1x1x8x8xf32>
    tpu.vector_store %arg17[%c0_34, %c0_35, %c0_36, %c0_37], %47 {strides = array<i32>} : memref<1x1x8x8xf32, #tpu.memory_space<vmem>>, vector<1x1x8x8xf32>,
    %48 = arith.truncf %44 : vector<8x8xf32> to vector<8x8xbf16>
    %49 = arith.truncf %26 : vector<8x8xf32> to vector<8x8xbf16>
    %cst_38 = arith.constant dense<0.000000e+00> : vector<8x8xf32>
    %50 = tpu.matmul %48, %49, %cst_38 {dimension_numbers = #tpu.dot_dimension_numbers<[1], [0], [0], [1], [0, 0, 1, 1], [], []>} : vector<8x8xbf16>, vector<8x8xbf16>, vector<8x8xf32> -> vector<8x8xf32>
    %51 = arith.truncf %50 : vector<8x8xf32> to vector<8x8xbf16>
    %c0_39 = arith.constant 0 : index
    %c0_40 = arith.constant 0 : index
    %c0_41 = arith.constant 0 : index
    %52 = vector.load %arg10[%c0_39, %c0_40, %c0_41] : memref<1x8x32xbf16, #tpu.memory_space<vmem>>, vector<1x8x32xbf16>
    %53 = vector.shape_cast %52 : vector<1x8x32xbf16> to vector<8x32xbf16>
    %cst_42 = arith.constant dense<0.000000e+00> : vector<8x32xf32>
    %54 = tpu.matmul %51, %53, %cst_42 {dimension_numbers = #tpu.dot_dimension_numbers<[1], [0], [0], [1], [0, 0, 1, 1], [], []>} : vector<8x8xbf16>, vector<8x32xbf16>, vector<8x32xf32> -> vector<8x32xf32>
    %c0_i32 = arith.constant 0 : i32
    %55 = arith.cmpi eq, %arg1, %c0_i32 : i32
    %56 = arith.extui %55 : i1 to i32
    %c0_i32_43 = arith.constant 0 : i32
    %57 = arith.cmpi ne, %56, %c0_i32_43 : i32
    scf.if %57 {
      %c0_47 = arith.constant 0 : index
      %c0_48 = arith.constant 0 : index
      %64 = vector.load %arg18[%c0_47, %c0_48] : memref<8x32xf32, #tpu.memory_space<vmem>>, vector<8x32xf32>
      tpu.vector_store %arg18[%c0_47, %c0_48], %54 {strides = array<i32>} : memref<8x32xf32, #tpu.memory_space<vmem>>, vector<8x32xf32>,
    } else {
    }
    %c0_i32_44 = arith.constant 0 : i32
    %58 = arith.cmpi sgt, %arg1, %c0_i32_44 : i32
    %59 = arith.extui %58 : i1 to i32
    %c0_i32_45 = arith.constant 0 : i32
    %60 = arith.cmpi ne, %59, %c0_i32_45 : i32
    scf.if %60 {
      %c0_47 = arith.constant 0 : index
      %c0_48 = arith.constant 0 : index
      %64 = vector.load %arg18[%c0_47, %c0_48] : memref<8x32xf32, #tpu.memory_space<vmem>>, vector<8x32xf32>
      %65 = arith.addf %64, %54 : vector<8x32xf32>
      %c0_49 = arith.constant 0 : index
      %c0_50 = arith.constant 0 : index
      %66 = vector.load %arg18[%c0_49, %c0_50] : memref<8x32xf32, #tpu.memory_space<vmem>>, vector<8x32xf32>
      tpu.vector_store %arg18[%c0_49, %c0_50], %65 {strides = array<i32>} : memref<8x32xf32, #tpu.memory_space<vmem>>, vector<8x32xf32>,
    } else {
    }
    %c3_i32 = arith.constant 3 : i32
    %61 = arith.cmpi eq, %arg1, %c3_i32 : i32
    %62 = arith.extui %61 : i1 to i32
    %c0_i32_46 = arith.constant 0 : i32
    %63 = arith.cmpi ne, %62, %c0_i32_46 : i32
    scf.if %63 {
      %c0_47 = arith.constant 0 : index
      %c0_48 = arith.constant 0 : index
      %64 = vector.load %arg18[%c0_47, %c0_48] : memref<8x32xf32, #tpu.memory_space<vmem>>, vector<8x32xf32>
      %65 = arith.addf %1, %64 : vector<8x32xf32>
      %c0_49 = arith.constant 0 : index
      %c0_50 = arith.constant 0 : index
      %66 = vector.load %arg11[%c0_49, %c0_50] : memref<1x32xf32, #tpu.memory_space<vmem>>, vector<1x32xf32>
      %67 = vector.broadcast %66 : vector<1x32xf32> to vector<8x32xf32>
      %68 = arith.addf %65, %67 : vector<8x32xf32>
      %c0_51 = arith.constant 0 : index
      %c0_52 = arith.constant 0 : index
      %69 = vector.load %arg14[%c0_51, %c0_52] : memref<1x32xf32, #tpu.memory_space<vmem>>, vector<1x32xf32>
      %c0_53 = arith.constant 0 : index
      %c0_54 = arith.constant 0 : index
      %70 = vector.load %arg15[%c0_53, %c0_54] : memref<1x32xf32, #tpu.memory_space<vmem>>, vector<1x32xf32>
      %cst_55 = arith.constant dense<0.000000e+00> : vector<8xf32>
      %71 = vector.multi_reduction <add>, %68, %cst_55 [1] : vector<8x32xf32> to vector<8xf32>
      %72 = vector.shape_cast %71 : vector<8xf32> to vector<8x1xf32>
      %cst_56 = arith.constant 3.200000e+01 : f32
      %73 = vector.broadcast %cst_56 : f32 to vector<8x1xf32>
      %74 = arith.divf %72, %73 : vector<8x1xf32>
      %75 = vector.broadcast %74 : vector<8x1xf32> to vector<8x32xf32>
      %76 = arith.subf %68, %75 : vector<8x32xf32>
      %77 = arith.mulf %76, %76 : vector<8x32xf32>
      %cst_57 = arith.constant dense<0.000000e+00> : vector<8xf32>
      %78 = vector.multi_reduction <add>, %77, %cst_57 [1] : vector<8x32xf32> to vector<8xf32>
      %79 = vector.shape_cast %78 : vector<8xf32> to vector<8x1xf32>
      %cst_58 = arith.constant 3.200000e+01 : f32
      %80 = vector.broadcast %cst_58 : f32 to vector<8x1xf32>
      %81 = arith.divf %79, %80 : vector<8x1xf32>
      %cst_59 = arith.constant 9.99999997E-7 : f32
      %82 = vector.broadcast %cst_59 : f32 to vector<8x1xf32>
      %83 = arith.addf %81, %82 : vector<8x1xf32>
      %84 = math.rsqrt %83 : vector<8x1xf32>
      %85 = vector.broadcast %84 : vector<8x1xf32> to vector<8x32xf32>
      %86 = arith.mulf %76, %85 : vector<8x32xf32>
      %87 = vector.broadcast %69 : vector<1x32xf32> to vector<8x32xf32>
      %88 = arith.mulf %86, %87 : vector<8x32xf32>
      %89 = vector.broadcast %70 : vector<1x32xf32> to vector<8x32xf32>
      %90 = arith.addf %88, %89 : vector<8x32xf32>
      %c0_60 = arith.constant 0 : index
      %c0_61 = arith.constant 0 : index
      %c0_62 = arith.constant 0 : index
      %91 = vector.load %arg16[%c0_60, %c0_61, %c0_62] : memref<1x8x32xf32, #tpu.memory_space<vmem>>, vector<1x8x32xf32>
      %92 = vector.shape_cast %91 : vector<1x8x32xf32> to vector<8x32xf32>
      %93 = vector.shape_cast %90 : vector<8x32xf32> to vector<1x8x32xf32>
      tpu.vector_store %arg16[%c0_60, %c0_61, %c0_62], %93 {strides = array<i32>} : memref<1x8x32xf32, #tpu.memory_space<vmem>>, vector<1x8x32xf32>,
    } else {
    }
    return
  }
  func.func @transform_0(%arg0: i32, %arg1: i32) -> (i32, i32, i32) {
    %c0_i32 = arith.constant 0 : i32
    %c0_i32_0 = arith.constant 0 : i32
    %c0_i32_1 = arith.constant 0 : i32
    return %arg0, %c0_i32, %c0_i32_0 : i32, i32, i32
  }
  func.func @transform_1(%arg0: i32, %arg1: i32) -> (i32, i32, i32) {
    %c0_i32 = arith.constant 0 : i32
    %c0_i32_0 = arith.constant 0 : i32
    %c0_i32_1 = arith.constant 0 : i32
    return %arg0, %c0_i32, %c0_i32_0 : i32, i32, i32
  }
  func.func @transform_2(%arg0: i32, %arg1: i32) -> (i32, i32, i32) {
    %c0_i32 = arith.constant 0 : i32
    %c0_i32_0 = arith.constant 0 : i32
    %c0_i32_1 = arith.constant 0 : i32
    return %arg1, %c0_i32, %c0_i32_0 : i32, i32, i32
  }
  func.func @transform_3(%arg0: i32, %arg1: i32) -> (i32, i32, i32) {
    %c0_i32 = arith.constant 0 : i32
    %c0_i32_0 = arith.constant 0 : i32
    %c0_i32_1 = arith.constant 0 : i32
    return %arg1, %c0_i32, %c0_i32_0 : i32, i32, i32
  }
  func.func @transform_4(%arg0: i32, %arg1: i32) -> (i32, i32, i32) {
    %c0_i32 = arith.constant 0 : i32
    %c0_i32_0 = arith.constant 0 : i32
    %c0_i32_1 = arith.constant 0 : i32
    return %arg1, %c0_i32, %c0_i32_0 : i32, i32, i32
  }
  func.func @transform_5(%arg0: i32, %arg1: i32) -> (i32, i32, i32) {
    %c0_i32 = arith.constant 0 : i32
    %c0_i32_0 = arith.constant 0 : i32
    %c0_i32_1 = arith.constant 0 : i32
    return %arg1, %c0_i32, %c0_i32_0 : i32, i32, i32
  }
  func.func @transform_6(%arg0: i32, %arg1: i32) -> (i32, i32, i32) {
    %c0_i32 = arith.constant 0 : i32
    %c0_i32_0 = arith.constant 0 : i32
    %c0_i32_1 = arith.constant 0 : i32
    return %arg1, %c0_i32, %c0_i32_0 : i32, i32, i32
  }
  func.func @transform_7(%arg0: i32, %arg1: i32) -> (i32, i32, i32) {
    %c0_i32 = arith.constant 0 : i32
    %c0_i32_0 = arith.constant 0 : i32
    %c0_i32_1 = arith.constant 0 : i32
    return %arg1, %c0_i32, %c0_i32_0 : i32, i32, i32
  }
  func.func @transform_8(%arg0: i32, %arg1: i32) -> (i32, i32, i32) {
    %c0_i32 = arith.constant 0 : i32
    %c0_i32_0 = arith.constant 0 : i32
    %c0_i32_1 = arith.constant 0 : i32
    return %arg1, %c0_i32, %c0_i32_0 : i32, i32, i32
  }
  func.func @transform_9(%arg0: i32, %arg1: i32) -> (i32, i32) {
    %c0_i32 = arith.constant 0 : i32
    %c0_i32_0 = arith.constant 0 : i32
    %c0_i32_1 = arith.constant 0 : i32
    return %c0_i32, %c0_i32_0 : i32, i32
  }
  func.func @transform_10(%arg0: i32, %arg1: i32) -> (i32, i32, i32) {
    %c0_i32 = arith.constant 0 : i32
    %c0_i32_0 = arith.constant 0 : i32
    %c0_i32_1 = arith.constant 0 : i32
    return %arg1, %c0_i32, %c0_i32_0 : i32, i32, i32
  }
  func.func @transform_11(%arg0: i32, %arg1: i32) -> (i32, i32, i32) {
    %c0_i32 = arith.constant 0 : i32
    %c0_i32_0 = arith.constant 0 : i32
    %c0_i32_1 = arith.constant 0 : i32
    return %arg0, %c0_i32, %c0_i32_0 : i32, i32, i32
  }
  func.func @transform_12(%arg0: i32, %arg1: i32) -> (i32, i32) {
    %c0_i32 = arith.constant 0 : i32
    %c0_i32_0 = arith.constant 0 : i32
    %c0_i32_1 = arith.constant 0 : i32
    return %c0_i32, %c0_i32_0 : i32, i32
  }
  func.func @transform_13(%arg0: i32, %arg1: i32) -> (i32, i32) {
    %c0_i32 = arith.constant 0 : i32
    %c0_i32_0 = arith.constant 0 : i32
    %c0_i32_1 = arith.constant 0 : i32
    return %c0_i32, %c0_i32_0 : i32, i32
  }
  func.func @transform_14(%arg0: i32, %arg1: i32) -> (i32, i32, i32) {
    %c0_i32 = arith.constant 0 : i32
    %c0_i32_0 = arith.constant 0 : i32
    %c0_i32_1 = arith.constant 0 : i32
    return %arg0, %c0_i32, %c0_i32_0 : i32, i32, i32
  }
  func.func @transform_15(%arg0: i32, %arg1: i32) -> (i32, i32, i32, i32) {
    %c0_i32 = arith.constant 0 : i32
    %c0_i32_0 = arith.constant 0 : i32
    %c0_i32_1 = arith.constant 0 : i32
    return %arg0, %arg1, %c0_i32, %c0_i32_0 : i32, i32, i32, i32
  }
}

module attributes {stable_mosaic.version = 11 : i64} {
  func.func @_lm_head_kernel(%arg0: i32, %arg1: i32, %arg2: memref<16x32xf32, #tpu.memory_space<vmem>>, %arg3: memref<64x32xbf16, #tpu.memory_space<vmem>>, %arg4: memref<16x64xf32, #tpu.memory_space<vmem>>) attributes {dimension_semantics = [#tpu.dimension_semantics<parallel>, #tpu.dimension_semantics<parallel>], iteration_bounds = array<i64: 1, 1>, scalar_prefetch = 0 : i64, scratch_operands = 0 : i64, tpu.core_type = #tpu.core_type<tc>, window_params = [{transform_indices = @transform_0, window_bounds = array<i64: 16, 32>}, {transform_indices = @transform_1, window_bounds = array<i64: 64, 32>}, {transform_indices = @transform_2, window_bounds = array<i64: 16, 64>}]} {
    %c0 = arith.constant 0 : index
    %c0_0 = arith.constant 0 : index
    %0 = vector.load %arg2[%c0, %c0_0] : memref<16x32xf32, #tpu.memory_space<vmem>>, vector<16x32xf32>
    %1 = arith.truncf %0 : vector<16x32xf32> to vector<16x32xbf16>
    %c0_1 = arith.constant 0 : index
    %c0_2 = arith.constant 0 : index
    %2 = vector.load %arg3[%c0_1, %c0_2] : memref<64x32xbf16, #tpu.memory_space<vmem>>, vector<64x32xbf16>
    %cst = arith.constant dense<0.000000e+00> : vector<16x64xf32>
    %3 = tpu.matmul %1, %2, %cst {dimension_numbers = #tpu.dot_dimension_numbers<[1], [1], [0], [0], [0, 0, 1, 0], [], []>} : vector<16x32xbf16>, vector<64x32xbf16>, vector<16x64xf32> -> vector<16x64xf32>
    %c0_3 = arith.constant 0 : index
    %c0_4 = arith.constant 0 : index
    %4 = vector.load %arg4[%c0_3, %c0_4] : memref<16x64xf32, #tpu.memory_space<vmem>>, vector<16x64xf32>
    tpu.vector_store %arg4[%c0_3, %c0_4], %3 {strides = array<i32>} : memref<16x64xf32, #tpu.memory_space<vmem>>, vector<16x64xf32>,
    return
  }
  func.func @transform_0(%arg0: i32, %arg1: i32) -> (i32, i32) {
    %c0_i32 = arith.constant 0 : i32
    %c0_i32_0 = arith.constant 0 : i32
    return %arg0, %c0_i32 : i32, i32
  }
  func.func @transform_1(%arg0: i32, %arg1: i32) -> (i32, i32) {
    %c0_i32 = arith.constant 0 : i32
    %c0_i32_0 = arith.constant 0 : i32
    return %arg1, %c0_i32 : i32, i32
  }
  func.func @transform_2(%arg0: i32, %arg1: i32) -> (i32, i32) {
    %c0_i32 = arith.constant 0 : i32
    return %arg0, %arg1 : i32, i32
  }
}

</mosaic_0001>

<bundles_post_ra>
// kernel: _lambda_.21
= control target key start
LH: loop header
LB: loop body
LE: loop exit
PB: predicated region body
PF: predicated region fallthrough
CT: control target
= control target key end

     0   :  { %v173_v1 = vmov 0.0   ;;  %vm44_vm0 = vcmask 261120   ;;  %s219_s0 = inlined_call_operand.vmem [shape: f32[16,32], index: 0, kind: input, shape index: {}]   ;;  %s220_s1 = inlined_call_operand.vmem [shape: bf16[64,32], index: 1, kind: input, shape index: {}]   ;;  %s221_s2 = inlined_call_operand.hbm [shape: f32[16,64], index: 2, kind: output, shape index: {}]  }
   0x1   :  { %v147_v0 = vld [vmem:[%s220_s1 + $0x18] sm:$0xff]   ;;  %130 = vmatprep.subr.bf16.mxu0 %v173_v1  ;;  %v148_v3 = vld [vmem:[%s220_s1 + $0x10] sm:$0xff]  }
   0x2   :  { %v58_v2 = vsel %vm44_vm0, %v147_v0, 0 }
   0x3   :  { %131 = vmatpush3.bf16.xpose.msra.mxu0 %v58_v2 }
   0x4   :  { %132 = vmatprep.subr.bf16.mxu0 %v173_v1 }
   0x5   :  { %7 = vsyncpa [#allocation3], 0  ;;  %vm174_vm1 = vmmov 0   ;;  %v55_v4 = vsel %vm44_vm0, %v148_v3, 0  ;;  %v149_v5 = vld [vmem:[%s220_s1 + $0x8] sm:$0xff]   ;;  %v150_v7 = vld [vmem:[%s220_s1] sm:$0xff]  }
   0x6   :  { %138 = vmatprep.mubr.msk.bf16.mxu0 %vm174_vm1, %v173_v1  ;;  %v52_v6 = vsel %vm44_vm0, %v149_v5, 0  ;;  %v49_v8 = vsel %vm44_vm0, %v150_v7, 0  ;;  %v13_v9 = vld [vmem:[%s219_s0] sm:$0xff]  ;;  %v14_v10 = vld [vmem:[%s219_s0 + $0x8] sm:$0xff]  ;;  %vm101_vm2 = vcmask 523264   ;;  %s175_s21 = smov [#allocation2]  }
   0x7   :  { %v15_v11 = vpack.c.bf16 %v14_v10, %v13_v9  ;;  %s109_s22 = sshll.u32 %s175_s21, 4  ;;  %s110_s22 = int_to_ptr.vmem [resolvable:$true] %s109_s22 }
   0x8   :  { %s151_s1 = scalar_lea.vmem %s110_s22, 256  ;;  %p156_p1 = scmp.lt.s32.totalorder %s110_s22, %s110_s22 }
   0x9   :  { %p152_p0 = scmp.ne.s32.totalorder %s110_s22, %s151_s1  ;;  %p157_p2 = scmp.lt.s32.totalorder %s151_s1, %s151_s1 }
   0xb   :  { %133 = vmatpush3.bf16.xpose.msra.mxu0 %v55_v4  ;;  %p158_p3 = por %p157_p2, %p156_p1 }
   0xc   :  { %134 = vmatprep.subr.bf16.mxu0 %v173_v1 }
   0xd   :  { %p159_p4 = pnand %p158_p3, %p152_p0 }
  0x13   :  { %135 = vmatpush3.bf16.xpose.msra.mxu0 %v52_v6 }
  0x14   :  { %136 = vmatprep.subr.bf16.mxu0 %v173_v1 }
  0x1b   :  { %137 = vmatpush3.bf16.xpose.msra.mxu0 %v49_v8 }
  0x22   :  { %139 = vmatmul.mubr.msk.bf16.vlgmr.msra.gmra.mxu0 %vm44_vm0, %v15_v11 }
  0xe2   :  { %v94_v12 = vpop.f32.mrf.mxu0 }
  0xe3   :  { %102 = vst.msk [vmem:[#allocation2] sm:$0xff] %vm101_vm2, %v94_v12 }
  0xe4   :  { %v140_v13 = vpop.f32.mrf.mxu0 }
  0xe6   :  { %v97_v14 = vpop.f32.mrf.mxu0 }
  0xe7   :  { %103 = vst.msk [vmem:[#allocation2 + $0x8] sm:$0xff] %vm101_vm2, %v97_v14 }
  0xe8   :  { %v141_v15 = vpop.f32.mrf.mxu0 }
  0xe9   :  { %162 = shalt.err (!%p159_p4)
}
  0xea   :  { %s176_s0 = smov 128   ;;  %s177_s23 = smov 8  }
  0xeb   :  { %115 = dma.vmem_to_hbm [thread:$0]  %s110_s22, 256, %s221_s2, [#allocation3], %s176_s0, %s176_s0, %s177_s23  }
  0xec   :  { %171 = dma.done.wait [#allocation3], 256  }
  0xed   :  { %172 = vsyncadd [#allocation3], 4294967040 }
  0xee   :  { %119 = vsyncpa [#allocation3], 1 }

// kernel: _lambda_.12
= control target key start
LH: loop header
LB: loop body
LE: loop exit
PB: predicated region body
PF: predicated region fallthrough
CT: control target
= control target key end

     0   :  { %v351_v0 = vmov 0.0   ;;  %vm352_vm0 = vmmov 0   ;;  %vm53_vm1 = vcmask 261120   ;;  %v353_v55 = vmov -1.0   ;;  %s451_s1 = inlined_call_operand.vmem [shape: bf16[32,64], index: 1, kind: input, shape index: {}]   ;;  %s452_s0 = inlined_call_operand.vmem [shape: f32[16,32], index: 0, kind: input, shape index: {}]   ;;  %s453_s3 = inlined_call_operand.vmem [shape: bf16[64,32], index: 3, kind: input, shape index: {}]   ;;  %s454_s2 = inlined_call_operand.vmem [shape: f32[1,64], index: 2, kind: input, shape index: {}]   ;;  %s455_s4 = inlined_call_operand.vmem [shape: f32[1,32], index: 4, kind: input, shape index: {}]   ;;  %s456_s5 = inlined_call_operand.vmem [shape: f32[1,32], index: 5, kind: input, shape index: {}]   ;;  %s457_s6 = inlined_call_operand.vmem [shape: f32[1,32], index: 6, kind: input, shape index: {}]   ;;  %s458_s7 = inlined_call_operand.vmem [shape: f32[16,32], index: 7, kind: output, shape index: {}]  }
   0x1   :  { %310 = vmatprep.subr.bf16.mxu0 %v351_v0  ;;  %v333_v1 = vld [vmem:[%s451_s1 + $0x8] sm:$0xff]   ;;  %314 = vmatprep.mubr.msk.bf16.mxu0 %vm352_vm0, %v351_v0  ;;  %v334_v2 = vld [vmem:[%s451_s1] sm:$0xff]   ;;  %v335_v6 = vld [vmem:[%s453_s3 + $0x18] sm:$0xff]   ;;  %vm192_vm4 = vcmask 523264  }
   0x2   :  { %318 = vmatprep.subr.bf16.mxu1 %v351_v0  ;;  %326 = vmatprep.mubr.msk.bf16.mxu1 %vm352_vm0, %v351_v0  ;;  %v403_v3 = vld [vmem:[%s452_s0] sm:$0xff]  ;;  %v408_v4 = vld [vmem:[%s452_s0 + $0x8] sm:$0xff]  ;;  %v336_v7 = vld [vmem:[%s453_s3 + $0x10] sm:$0xff]  }
   0x3   :  { %311 = vmatpush3.bf16.msra.mxu0 %v333_v1  ;;  %v29_v5 = vpack.c.bf16 %v408_v4, %v403_v3  ;;  %319 = vmatpush3.bf16.msra.mxu1 %v335_v6  ;;  %v337_v8 = vld [vmem:[%s453_s3 + $0x8] sm:$0xff]   ;;  %v338_v9 = vld [vmem:[%s453_s3] sm:$0xff]  }
   0x4   :  { %312 = vmatprep.subr.bf16.mxu0 %v351_v0  ;;  %320 = vmatprep.subr.bf16.mxu1 %v351_v0  ;;  %v290_v10 = vld [vmem:[%s454_s2] ss:$0 sm:$0xff] }
   0x7   :  { %313 = vmatpush3.bf16.msra.mxu0 %v334_v2  ;;  %321 = vmatpush3.bf16.msra.mxu1 %v336_v7  ;;  %v294_v7 = vld [vmem:[%s455_s4] ss:$0 sm:$0xff] }
   0x8   :  { %322 = vmatprep.subr.bf16.mxu1 %v351_v0 }
   0xa   :  { %315 = vmatmul.mubr.msk.bf16.vlgmr.msra.gmra.mxu0 %vm53_vm1, %v29_v5 }
   0xb   :  { %323 = vmatpush3.bf16.msra.mxu1 %v337_v8 }
   0xc   :  { %324 = vmatprep.subr.bf16.mxu1 %v351_v0 }
   0xf   :  { %325 = vmatpush3.bf16.msra.mxu1 %v338_v9 }
  0xca   :  { %v91_v11 = vpop.f32.mrf.mxu0 }
  0xcb   :  { %v92_v12 = vadd.f32 %v290_v10, %v91_v11 }
  0xcc   :  { %v316_v13 = vpop.f32.mrf.mxu0 }
  0xcd   :  { %v100_v14 = vmul.f32 0.70710677, %v92_v12  ;;  %v98_v63 = vmul.f32 0.5, %v92_v12 }
  0xce   :  { %v94_v15 = vpop.f32.mrf.mxu0 }
  0xcf   :  { %v106_v16 = vand.u32 2147483647, %v100_v14  ;;  %v95_v17 = vadd.f32 %v290_v10, %v94_v15  ;;  %vm102_vm2 = vcmp.ge.f32.partialorder %v100_v14, 0.0 }
  0xd0   :  { %v317_v18 = vpop.f32.mrf.mxu0  ;;  %v104_v56 = vsel %vm102_vm2, 1.0, %v353_v55 }
  0xd1   :  { %v108_v19 = vmul.f32 0.3275911, %v106_v16  ;;  %v101_v20 = vmul.f32 0.70710677, %v95_v17  ;;  %v134_v25 = vsub.f32 0.0, %v106_v16  ;;  %v99_v0 = vmul.f32 0.5, %v95_v17 }
  0xd3   :  { %v110_v21 = vadd.f32 1.0, %v108_v19  ;;  %v107_v22 = vand.u32 2147483647, %v101_v20  ;;  %v136_v26 = vmul.f32 %v134_v25, %v106_v16  ;;  %vm103_vm3 = vcmp.ge.f32.partialorder %v101_v20, 0.0 }
  0xd4   :  { %v105_v60 = vsel %vm103_vm3, 1.0, %v353_v55 }
  0xd5   :  { %339 = vrcp.f32 %v110_v21  ;;  %v109_v23 = vmul.f32 0.3275911, %v107_v22  ;;  %v135_v27 = vsub.f32 0.0, %v107_v22  ;;  %v138_v30 = vmul.f32 1.442695, %v136_v26 }
  0xd7   :  { %v111_v24 = vadd.f32 1.0, %v109_v23  ;;  %v137_v31 = vmul.f32 %v135_v27, %v107_v22 }
  0xd9   :  { %341 = vrcp.f32 %v111_v24  ;;  %v140_v36 = vmul.f32 1.442695, %v137_v31 }
  0xda   :  { %343 = vpow2.f32 %v138_v30 }
  0xdb   :  { %345 = vpow2.f32 %v140_v36 }
  0xe2   :  { %v340_v28 = vpop.eup %339 }
  0xe3   :  { %v116_v29 = vmul.f32 1.0614054, %v340_v28 }
  0xe5   :  { %v118_v32 = vadd.f32 -1.4531521, %v116_v29 }
  0xe6   :  { %v342_v33 = vpop.eup %341 }
  0xe7   :  { %v120_v34 = vmul.f32 %v340_v28, %v118_v32  ;;  %v117_v35 = vmul.f32 1.0614054, %v342_v33  ;;  %v344_v49 = vpop.eup %343 }
  0xe8   :  { %v346_v54 = vpop.eup %345 }
  0xe9   :  { %v122_v37 = vadd.f32 1.4214138, %v120_v34  ;;  %v119_v38 = vadd.f32 -1.4531521, %v117_v35  ;;  %v301_v35 = vld [vmem:[%s457_s6] ss:$0 sm:$0xff] }
  0xeb   :  { %v124_v39 = vmul.f32 %v340_v28, %v122_v37  ;;  %v121_v40 = vmul.f32 %v342_v33, %v119_v38 }
  0xed   :  { %v126_v41 = vadd.f32 -0.28449672, %v124_v39  ;;  %v123_v42 = vadd.f32 1.4214138, %v121_v40 }
  0xef   :  { %v128_v43 = vmul.f32 %v340_v28, %v126_v41  ;;  %v125_v44 = vmul.f32 %v342_v33, %v123_v42 }
  0xf1   :  { %v130_v45 = vadd.f32 0.2548296, %v128_v43  ;;  %v127_v46 = vadd.f32 -0.28449672, %v125_v44 }
  0xf3   :  { %v132_v47 = vmul.f32 %v340_v28, %v130_v45  ;;  %v129_v48 = vmul.f32 %v342_v33, %v127_v46 }
  0xf5   :  { %v142_v50 = vmul.f32 %v344_v49, %v132_v47  ;;  %v131_v51 = vadd.f32 0.2548296, %v129_v48 }
  0xf7   :  { %v144_v52 = vsub.f32 1.0, %v142_v50  ;;  %v133_v53 = vmul.f32 %v342_v33, %v131_v51  ;;  %v300_v33 = vld [vmem:[%s456_s5] ss:$0 sm:$0xff] }
  0xf9   :  { %v146_v57 = vmul.f32 %v144_v52, %v104_v56  ;;  %v143_v58 = vmul.f32 %v346_v54, %v133_v53 }
  0xfb   :  { %v145_v59 = vsub.f32 1.0, %v143_v58  ;;  %v148_v61 = vadd.f32 1.0, %v146_v57 }
  0xfd   :  { %v147_v62 = vmul.f32 %v145_v59, %v105_v60  ;;  %v150_v2 = vmul.f32 %v148_v61, %v98_v63 }
  0xff   :  { %v149_v1 = vadd.f32 1.0, %v147_v62 }
 0x101   :  { %v151_v5 = vmul.f32 %v149_v1, %v99_v0 }
 0x103   :  { %v152_v6 = vpack.c.bf16 %v151_v5, %v150_v2 }
 0x105   :  { %327 = vmatmul.mubr.msk.bf16.vlgmr.msra.gmra.mxu1 %vm192_vm4, %v152_v6 }
 0x1c5   :  { %v230_v8 = vpop.f32.mrf.mxu1 }
 0x1c6   :  { %v231_v9 = vadd.f32 %v294_v7, %v230_v8 }
 0x1c7   :  { %v328_v10 = vpop.f32.mrf.mxu1 }
 0x1c8   :  { %v237_v11 = vadd.f32 %v231_v9, %v403_v3 }
 0x1c9   :  { %v233_v13 = vpop.f32.mrf.mxu1 }
 0x1ca   :  { %v234_v14 = vadd.f32 %v294_v7, %v233_v13  ;;  %v241_v12 = vsel %vm53_vm1, %v237_v11, 0.0 }
 0x1cb   :  { %242 = vadd.xlane.f32.xlu0 %v241_v12  ;;  %v329_v15 = vpop.f32.mrf.mxu1 }
 0x1cc   :  { %v238_v16 = vadd.f32 %v234_v14, %v408_v4 }
 0x1ce   :  { %v244_v17 = vsel %vm53_vm1, %v238_v16, 0.0 }
 0x1cf   :  { %245 = vadd.xlane.f32.xlu0 %v244_v17 }
 0x254   :  { %v243_v18 = vpop.xlane.xlu0 %242 }
 0x255   :  { %v248_v19 = vmul.f32 0.03125, %v243_v18 }
 0x257   :  { %v250_v20 = vsub.f32 %v237_v11, %v248_v19 }
 0x258   :  { %v246_v21 = vpop.xlane.xlu0 %245 }
 0x259   :  { %v249_v22 = vmul.f32 0.03125, %v246_v21  ;;  %v252_v23 = vmul.f32 %v250_v20, %v250_v20 }
 0x25b   :  { %v251_v24 = vsub.f32 %v238_v16, %v249_v22  ;;  %v254_v3 = vsel %vm53_vm1, %v252_v23, 0.0 }
 0x25c   :  { %255 = vadd.xlane.f32.xlu1 %v254_v3 }
 0x25d   :  { %v253_v25 = vmul.f32 %v251_v24, %v251_v24 }
 0x25f   :  { %v257_v26 = vsel %vm53_vm1, %v253_v25, 0.0 }
 0x260   :  { %258 = vadd.xlane.f32.xlu1 %v257_v26 }
 0x2e5   :  { %v256_v27 = vpop.xlane.xlu1 %255 }
 0x2e6   :  { %v260_v28 = vmul.f32 0.03125, %v256_v27 }
 0x2e8   :  { %v262_v4 = vadd.f32 1e-06, %v260_v28 }
 0x2e9   :  { %v259_v29 = vpop.xlane.xlu1 %258 }
 0x2ea   :  { %347 = vrsqrt.f32 %v262_v4  ;;  %v261_v30 = vmul.f32 0.03125, %v259_v29 }
 0x2ec   :  { %v263_v31 = vadd.f32 1e-06, %v261_v30 }
 0x2ee   :  { %349 = vrsqrt.f32 %v263_v31 }
 0x2f7   :  { %v348_v32 = vpop.eup %347 }
 0x2f8   :  { %v266_v34 = vmul.f32 %v348_v32, %v250_v20 }
 0x2fa   :  { %v274_v36 = vmul.f32 %v300_v33, %v266_v34 }
 0x2fb   :  { %v350_v37 = vpop.eup %349 }
 0x2fc   :  { %v282_v38 = vadd.f32 %v301_v35, %v274_v36  ;;  %v267_v39 = vmul.f32 %v350_v37, %v251_v24 }
 0x2fe   :  { %284 = vst.msk [vmem:[%s458_s7] sm:$0xff] %vm53_vm1, %v282_v38  ;;  %v275_v40 = vmul.f32 %v300_v33, %v267_v39 }
 0x300   :  { %v283_v41 = vadd.f32 %v301_v35, %v275_v40 }
 0x302   :  { %285 = vst.msk [vmem:[%s458_s7 + $0x8] sm:$0xff] %vm53_vm1, %v283_v41 }

// kernel: _lambda_.11
= control target key start
LH: loop header
LB: loop body
LE: loop exit
PB: predicated region body
PF: predicated region fallthrough
CT: control target
= control target key end

     0   :  { %s1944_s0 = inlined_call_operand.vmem [shape: f32[2,8,32], index: 0, kind: input, shape index: {}, may-alias: {0,1}]   ;;  %s1945_s1 = inlined_call_operand.vmem [shape: f32[2,8,32], index: 1, kind: input, shape index: {}, may-alias: {0,1}]   ;;  %s1946_s2 = inlined_call_operand.vmem [shape: bf16[4,32,8], index: 2, kind: input, shape index: {}]   ;;  %s1947_s3 = inlined_call_operand.vmem [shape: f32[4,1,8], index: 3, kind: input, shape index: {}]   ;;  %s1948_s4 = inlined_call_operand.vmem [shape: bf16[4,32,8], index: 4, kind: input, shape index: {}]   ;;  %s1949_s5 = inlined_call_operand.vmem [shape: f32[4,1,8], index: 5, kind: input, shape index: {}]   ;;  %s1950_s6 = inlined_call_operand.vmem [shape: bf16[4,32,8], index: 6, kind: input, shape index: {}]   ;;  %s1951_s7 = inlined_call_operand.vmem [shape: f32[4,1,8], index: 7, kind: input, shape index: {}]   ;;  %s1952_s8 = inlined_call_operand.vmem [shape: bf16[4,8,32], index: 8, kind: input, shape index: {}]   ;;  %s1953_s9 = inlined_call_operand.vmem [shape: f32[1,32], index: 9, kind: input, shape index: {}]   ;;  %s1954_s10 = inlined_call_operand.vmem [shape: f32[4,8,8], index: 10, kind: input, shape index: {}]   ;;  %s1955_s11 = inlined_call_operand.vmem [shape: f32[2,8,8], index: 11, kind: input, shape index: {}]   ;;  %s1956_s12 = inlined_call_operand.vmem [shape: f32[1,32], index: 12, kind: input, shape index: {}]   ;;  %s1957_s13 = inlined_call_operand.vmem [shape: f32[1,32], index: 13, kind: input, shape index: {}]   ;;  %s1958_s14 = inlined_call_operand.vmem [shape: f32[2,8,32], index: 14, kind: output, shape index: {0}]   ;;  %s1959_s15 = inlined_call_operand.hbm [shape: f32[2,4,8,8], index: 15, kind: output, shape index: {1}]  }
   0x1   :  { %1973 = sst [smem:[#allocation17_spill]] %s1946_s2 }
   0x2   :  { %1974 = sst [smem:[#allocation18_spill]] %s1948_s4 }
   0x3   :  { %1975 = sst [smem:[#allocation19_spill]] %s1957_s13 }
   0x4   :  { %1976 = sst [smem:[#allocation20_spill]] %s1959_s15 }
   0x5   :  { %21 = vsyncpa [#allocation4], 0 }
   0x6   :  { %23 = vsyncpa [#allocation4 + $0x1], 0  ;;  %s1700_s18 = smov 0   ;;  %s1702_s19 = smov 0  }
   0x7   :  { %s1704_s20 = smov 0   ;;  %s1706_s21 = smov 0  }
   0x8   :  { %s1708_s22 = smov 0   ;;  %s1710_s23 = smov 0  }
   0x9   :  { %s1712_s24 = smov 0   ;;  %s1714_s25 = smov 0  }
   0xa LB: > { %1977 = sst [smem:[#allocation6_spill]] %s1587_s18  ;;  %s1334_s26 = sadd.s32 4294967295, %s1615_s25   ;;  %s1615_s25 = sphi %s1714_s25, %s29_s25   ;;  %s1611_s24 = sphi %s1712_s24, %s2004_s24   ;;  %s1607_s23 = sphi %s1710_s23, %s2003_s23   ;;  %s1603_s22 = sphi %s1708_s22, %s2007_s22   ;;  %s1599_s21 = sphi %s1706_s21, %s2001_s21   ;;  %s1595_s20 = sphi %s1704_s20, %s2000_s20   ;;  %s1591_s19 = sphi %s1702_s19, %s2006_s19   ;;  %s1587_s18 = sphi %s1700_s18, %s2005_s18  }
   0xb   : > { %1978 = sst [smem:[#allocation7_spill]] %s1595_s20  ;;  %s1335_s27 = sadd.s32 4294967294, %s1615_s25  }
   0xc   : > { %1979 = sst [smem:[#allocation8_spill]] %s1603_s22  ;;  %s38_s28 = sadd.s32 1, %s1607_s23 }
   0xd   : > { %1980 = sst [smem:[#allocation9_spill]] %s1607_s23  ;;  %p39_p0 = scmp.ge.s32.totalorder %s38_s28, 4 }
   0xe   : > { %1981 = sst [smem:[#allocation10_spill]] %s1611_s24  ;;  %s41_s29 = sadd.s32 1, %s1611_s24 }
   0xf   : > { %1982 = sst [smem:[#allocation11_spill]] %s1615_s25  ;;  %p435_p1 = scmp.ne.s32.totalorder %s1595_s20, %s1591_s19 }
  0x10   : > { %p436_p2 = scmp.eq.s32.totalorder %s1334_s26, 7  ;;  %s2009_s28 = smov (%p39_p0, %s38_s28), 0 }
  0x11   : > { %1983 = sst [smem:[#allocation12_spill]] %s2009_s28  ;;  %s2011_s29 = smov (!%p39_p0, %s41_s29), %s1611_s24 }
  0x12   : > { %s421_s30 = ssub.s32 %s1607_s23, %s2009_s28  ;;  %p1751_p3 = por %p436_p2, %p435_p1 }
  0x13   : > { %p43_p4 = scmp.ge.s32.totalorder %s2011_s29, 2  ;;  %p441_p5 = scmp.ne.s32.totalorder %s1591_s19, %s1587_s18 }
  0x14   : > { %s1984_s16 = scalar_select %p1751_p3, 1, 0 }
  0x15   : > { %p442_p6 = scmp.eq.s32.totalorder %s1335_s27, 7  ;;  %p1338_p7 = scmp.ge.s32.totalorder %s1615_s25, 1 }
  0x16   : > { %1985 = sst [smem:[#allocation13_spill]] %s1984_s16  ;;  %s2013_s29 = smov (%p43_p4, %s2011_s29), 0 }
  0x17   : > { %1986 = sst [smem:[#allocation14_spill]] %s2013_s29  ;;  %p1760_p8 = por %p442_p6, %p441_p5 }
  0x18   : > { %p546_p9 = scmp.lt.s32.totalorder %s1615_s25, 9  ;;  %s420_s26 = ssub.s32 %s1611_s24, %s2013_s29 }
  0x19   : > { %s1987_s17 = scalar_select %p1760_p8, 1, 0 }
  0x1a   : > { %s425_s15 = sadd.s32 1, %s1595_s20  ;;  %s422_s13 = sor.u32 %s421_s30, %s420_s26 }
  0x1b   : > { %1988 = sst [smem:[#allocation15_spill]] %s1987_s17  ;;  %p547_p10 = pnand %p1338_p7, %p546_p9 }
  0x1c   : > { %p423_p11 = scmp.eq.s32.totalorder %s422_s13, 0  ;;  %p645_p12 = scmp.lt.s32.totalorder (!%p547_p10), %s1599_s21, 3 }
  0x1d   : > { %550 = sbr.rel (%p547_p10) target bundleno = 1515 (0x5eb), region = 76  ;;  %p637_p13 = scmp.lt.s32.totalorder (!%p547_p10), %s1603_s22, 1 }
  0x1e   : > { %s1769_s28 = scalar_select %p423_p11, %s1595_s20, %s425_s15  }
  0x1f   : > { %s1990_s4 = sld [smem:[#allocation18_spill]] (!%p547_p10)  ;;  %p1367_p0 = scmp.ne.s32.totalorder (!%p547_p10), %s1599_s21, 0 }
  0x20   : > { %1989 = sst [smem:[#allocation16_spill]] %s1769_s28 }
  0x21   : > { %s1991_s2 = sld [smem:[#allocation17_spill]] (!%p547_p10) }
  0x22   : > { %v1617_v0 = vmov 0.0   ;;  %s1776_s27 = scalar_select %p645_p12, %s1599_s21, 3  ;;  %vm1618_vm0 = vmmov 0   ;;  %vm713_vm1 = vcmask 261120   ;;  %vm889_vm2 = vcmask 64512  }
  0x23   : > { %1404 = vmatprep.subr.bf16.mxu1 %v1617_v0  ;;  %1396 = vmatprep.subr.bf16.mxu0 %v1617_v0  ;;  %s638_s13 = scalar_select %p637_p13, %s1603_s22, 1  ;;  %vm955_vm3 = vcmask 1043456  }
  0x24   : > { %1408 = vmatprep.mubr.msk.bf16.mxu1 %vm1618_vm0, %v1617_v0  ;;  %1400 = vmatprep.mubr.msk.bf16.mxu0 %vm1618_vm0, %v1617_v0  ;;  %s1378_s15 = sshll.u32 %s1776_s27, 4  ;;  %s660_s22 = scalar_lea.vmem %s1949_s5, %s1776_s27 }
  0x25   : > { %s657_s29 = scalar_lea.vmem %s1990_s4, %s1378_s15  ;;  %s1790_s20 = sshll.u32 %s638_s13, 3  ;;  %v1356_v9 = vld [vmem:[%s660_s22] ss:$0 sm:$0xff] }
  0x26   : > { %v1511_v1 = vld [vmem:[%s657_s29 + $0x8] sm:$0xff]   ;;  %s644_s25 = scalar_lea.vmem %s1945_s1, %s1790_s20  ;;  %s684_s30 = scalar_lea.vmem %s1958_s14, %s1790_s20  ;;  %v1513_v3 = vld [vmem:[%s657_s29] sm:$0xff]  }
  0x27   : > { %s649_s28 = scalar_lea.vmem %s1991_s2, %s1378_s15  ;;  %1405 = vmatpush3.bf16.msra.mxu1 %v1511_v1  ;;  %s640_s23 = scalar_lea.vmem %s1944_s0, %s1790_s20  ;;  %v688_v5 = vld [vmem:[%s644_s25] sm:$0xff] }
  0x28   : > { %v1512_v2 = vld [vmem:[%s649_s28 + $0x8] sm:$0xff]   ;;  %s1807_s2 = scalar_lea.vmem %s1950_s6, %s1378_s15  ;;  %1406 = vmatprep.subr.bf16.mxu1 %v1617_v0  ;;  %v1514_v4 = vld [vmem:[%s649_s28] sm:$0xff]   ;;  %v689_v7 = vpack.c.bf16 %v688_v5, %v688_v5  ;;  %s652_s29 = scalar_lea.vmem %s1947_s3, %s1776_s27 }
  0x29   : > { %1397 = vmatpush3.bf16.msra.mxu0 %v1512_v2  ;;  %v1811_v6 = vld [vmem:[%s640_s23] sm:$0xff]  ;;  %v1515_v24 = vld [vmem:[%s1807_s2 + $0x8] sm:$0xff]   ;;  %s1349_s16 = sshll.u32 %s1776_s27, 3  ;;  %s680_s13 = scalar_lea.vmem %s1955_s11, %s1790_s20 }
  0x2a   : > { %1398 = vmatprep.subr.bf16.mxu0 %v1617_v0  ;;  %v687_v8 = vpack.c.bf16 %v1811_v6, %v1811_v6  ;;  %v1352_v14 = vld [vmem:[%s652_s29] ss:$0 sm:$0xff]  ;;  %s676_s26 = scalar_lea.vmem %s1954_s10, %s1349_s16  ;;  %s668_s18 = scalar_lea.vmem %s1951_s7, %s1776_s27 }
  0x2b   : > { %1407 = vmatpush3.bf16.msra.mxu1 %v1513_v3  ;;  %v1516_v25 = vld [vmem:[%s1807_s2] sm:$0xff]   ;;  %s1348_s22 = sshll.u32 %s1776_s27, 2  ;;  %s634_s16 = sand.u32 1, %s1591_s19  }
  0x2c   : > { %1420 = vmatprep.subr.bf16.mxu1 %v1617_v0  ;;  %v888_v26 = vld [vmem:[%s676_s26] sm:$0xff]  ;;  %s672_s29 = scalar_lea.vmem %s1952_s8, %s1348_s22  ;;  %s1864_s17 = sshll.u32 %s634_s16, 3 }
  0x2d   : > { %1399 = vmatpush3.bf16.msra.mxu0 %v1514_v4  ;;  %v936_v28 = vld [vmem:[%s680_s13] sm:$0xff]  ;;  %s636_s15 = scalar_lea.vmem [#allocation3], %s1864_s17 }
  0x2e   : > { %1412 = vmatprep.subr.bf16.mxu0 %v1617_v0  ;;  %1409 = vmatmul.mubr.msk.bf16.vlgmr.msra.gmra.mxu1 %vm713_vm1, %v689_v7  ;;  %v1360_v43 = vld [vmem:[%s668_s18] ss:$0 sm:$0xff] }
  0x2f   : > { %1422 = vmatprep.mubr.msk.bf16.mxu1 %vm1618_vm0, %v1617_v0  ;;  %v1000_v48 = vld [vmem:[%s672_s29] sm:$0xf] }
  0x30   : > { %1401 = vmatmul.mubr.msk.bf16.vlgmr.msra.gmra.mxu0 %vm713_vm1, %v687_v8  ;;  %v1005_v49 = vsel %vm955_vm3, %v1000_v48, 0 }
  0x31   : > { %1416 = vmatprep.mubr.msk.bf16.mxu0 %vm1618_vm0, %v1617_v0  ;;  %1413 = vmatpush3.bf16.msra.mxu0 %v1515_v24 }
  0x32   : > { %1414 = vmatprep.subr.bf16.mxu0 %v1617_v0 }
  0x35   : > { %1415 = vmatpush3.bf16.msra.mxu0 %v1516_v25 }
  0x36   : > { %1426 = vmatprep.subr.bf16.mxu0 %v1617_v0 }
  0x38   : > { %1417 = vmatmul.mubr.msk.bf16.vlgmr.msra.gmra.mxu0 %vm713_vm1, %v689_v7 }
  0x39   : > { %1428 = vmatprep.mubr.msk.bf16.mxu0 %vm1618_vm0, %v1617_v0 }
  0xee   : > { %v817_v10 = vpop.f32.mrf.mxu1 }
  0xef   : > { %v818_v11 = vadd.f32 %v1356_v9, %v817_v10 }
  0xf0   : > { %v751_v12 = vpop.f32.mrf.mxu0  ;;  %v1410_v13 = vpop.f32.mrf.mxu1 }
  0xf1   : > { %v887_v15 = vpack.c.bf16 %v818_v11, %v818_v11  ;;  %v752_v19 = vadd.f32 %v1352_v14, %v751_v12 }
  0xf2   : > { %v1402_v16 = vpop.f32.mrf.mxu0  ;;  %v820_v17 = vpop.f32.mrf.mxu1 }
  0xf3   : > { %v894_v18 = vsel %vm889_vm2, %v887_v15, 0  ;;  %v886_v23 = vpack.c.bf16 %v752_v19, %v752_v19 }
  0xf4   : > { %v754_v20 = vpop.f32.mrf.mxu0  ;;  %v1411_v21 = vpop.f32.mrf.mxu1  ;;  %1421 = vmatpush3.bf16.xpose.msra.mxu1 %v894_v18 }
  0xf5   : > { %1432 = vmatprep.subr.bf16.mxu1 %v1617_v0 }
  0xf6   : > { %v1403_v22 = vpop.f32.mrf.mxu0 }
  0xf8   : > { %v880_v40 = vpop.f32.mrf.mxu0 }
  0xf9   : > { %v881_v45 = vadd.f32 %v1360_v43, %v880_v40 }
  0xfa   : > { %v1418_v41 = vpop.f32.mrf.mxu0 }
  0xfb   : > { %1423 = vmatmul.mubr.msk.bf16.vlgmr.msra.gmra.mxu1 %vm889_vm2, %v886_v23  ;;  %v951_v46 = vpack.c.bf16 %v881_v45, %v881_v45 }
  0xfc   : > { %1434 = vmatprep.mubr.msk.bf16.mxu1 %vm1618_vm0, %v1617_v0  ;;  %v883_v42 = vpop.f32.mrf.mxu0  ;;  %1433 = vmatpush3.bf16.msra.mxu1 %v1005_v49 }
  0xfd   : > { %v957_v47 = vsel %vm955_vm3, %v951_v46, 0 }
  0xfe   : > { %v1419_v44 = vpop.f32.mrf.mxu0  ;;  %1427 = vmatpush3.bf16.msra.mxu0 %v957_v47 }
 0x1bb   : > { %v930_v27 = vpop.f32.mrf.mxu1 }
 0x1bc   : > { %v931_v29 = vadd.f32 %v930_v27, %v888_v26 }
 0x1bd   : > { %v1424_v30 = vpop.f32.mrf.mxu1 }
 0x1be   : > { %v937_v31 = vadd.f32 %v936_v28, %v931_v29 }
 0x1bf   : > { %v933_v32 = vpop.f32.mrf.mxu1 }
 0x1c0   : > { %v938_v33 = vsel %vm889_vm2, %v937_v31, -inf }
 0x1c1   : > { %939 = vmax.xlane.f32.xlu0 %v938_v33  ;;  %v1425_v34 = vpop.f32.mrf.mxu1 }
 0x24a   : > { %v940_v35 = vpop.xlane.xlu0 %939 }
 0x24b   : > { %v941_v36 = vsub.f32 %v937_v31, %v940_v35 }
 0x24d   : > { %v942_v37 = vmul.f32 1.442695, %v941_v36 }
 0x24f   : > { %1517 = vpow2.f32 %v942_v37 }
 0x25c   : > { %v1518_v38 = vpop.eup %1517 }
 0x25d   : > { %v944_v39 = vsel %vm889_vm2, %v1518_v38, 0.0 }
 0x25e   : > { %945 = vadd.xlane.f32.xlu0 %v944_v39 }
 0x2e7   : > { %v946_v50 = vpop.xlane.xlu0 %945 }
 0x2e8   : > { %1519 = vrcp.f32 %v946_v50 }
 0x2f5   : > { %v1520_v51 = vpop.eup %1519 }
 0x2f6   : > { %v948_v52 = vmul.f32 %v1520_v51, %v1518_v38 }
 0x2f8   : > { %949 = vst.msk [vmem:[%s636_s15] sm:$0xff] %vm889_vm2, %v948_v52  ;;  %v950_v53 = vpack.c.bf16 %v948_v52, %v948_v52 }
 0x2fa   : > { %1429 = vmatmul.mubr.msk.bf16.vlgmr.msra.gmra.mxu0 %vm889_vm2, %v950_v53 }
 0x3ba   : > { %v993_v54 = vpop.f32.mrf.mxu0 }
 0x3bb   : > { %v999_v55 = vpack.c.bf16 %v993_v54, %v993_v54 }
 0x3bc   : > { %v1430_v56 = vpop.f32.mrf.mxu0 }
 0x3bd   : > { %1435 = vmatmul.mubr.msk.bf16.vlgmr.msra.gmra.mxu1 %vm889_vm2, %v999_v55 }
 0x3be   : > { %v996_v57 = vpop.f32.mrf.mxu0 }
 0x3c0   : > { %v1431_v58 = vpop.f32.mrf.mxu0 }
 0x47d   : > { %v1041_v59 = vpop.f32.mrf.mxu1 }
 0x47f   : > { %v1436_v60 = vpop.f32.mrf.mxu1  ;;  %1050 = sbr.rel (%p1367_p0) target bundleno = 1157 (0x485), region = 80 }
 0x481   : > { %v1044_v61 = vpop.f32.mrf.mxu1 }
 0x483   : > { %v1437_v62 = vpop.f32.mrf.mxu1 }
 0x484   : > { %1051 = vst.msk [vmem:[#allocation2] sm:$0xff] %vm713_vm1, %v1041_v59 }
 0x485 PF: > { %p1368_p1 = scmp.le.s32.totalorder %s1599_s21, 0 }
 0x487   : > { %1055 = sbr.rel (%p1368_p1) target bundleno = 1168 (0x490), region = 84 }
 0x48c   : > { %v1056_v63 = vld [vmem:[#allocation2] sm:$0xff] }
 0x48d   : > { %v1057_v0 = vadd.f32 %v1056_v63, %v1041_v59 }
 0x48f   : > { %1058 = vst.msk [vmem:[#allocation2] sm:$0xff] %vm713_vm1, %v1057_v0 }
 0x490 PF: > { %p1369_p2 = scmp.ne.s32.totalorder %s1599_s21, 3 }
 0x491   : > { %s1992_s4 = sld [smem:[#allocation19_spill]] (!%p1369_p2) }
 0x492   : > { %1062 = sbr.rel (%p1369_p2) target bundleno = 1489 (0x5d1), region = 88 }
 0x497   : > { %v1063_v1 = vld [vmem:[#allocation2] sm:$0xff] }
 0x498   : > { %v1370_v2 = vld [vmem:[%s1953_s9] ss:$0 sm:$0xff]  ;;  %v1064_v3 = vadd.f32 %v1063_v1, %v1811_v6 }
 0x499   : > { %v1371_v6 = vld [vmem:[%s1956_s12] ss:$0 sm:$0xff] }
 0x49a   : > { %v1072_v4 = vadd.f32 %v1370_v2, %v1064_v3  ;;  %v1372_v17 = vld [vmem:[%s1992_s4] ss:$0 sm:$0xff] }
 0x49c   : > { %v1075_v5 = vsel %vm713_vm1, %v1072_v4, 0.0 }
 0x49d   : > { %1076 = vadd.xlane.f32.xlu0 %v1075_v5 }
 0x526   : > { %v1077_v7 = vpop.xlane.xlu0 %1076 }
 0x527   : > { %v1079_v8 = vmul.f32 0.03125, %v1077_v7 }
 0x529   : > { %v1080_v9 = vsub.f32 %v1072_v4, %v1079_v8 }
 0x52b   : > { %v1081_v10 = vmul.f32 %v1080_v9, %v1080_v9 }
 0x52d   : > { %v1082_v11 = vsel %vm713_vm1, %v1081_v10, 0.0 }
 0x52e   : > { %1083 = vadd.xlane.f32.xlu0 %v1082_v11 }
 0x5b7   : > { %v1084_v12 = vpop.xlane.xlu0 %1083 }
 0x5b8   : > { %v1085_v13 = vmul.f32 0.03125, %v1084_v12 }
 0x5ba   : > { %v1086_v14 = vadd.f32 1e-06, %v1085_v13 }
 0x5bc   : > { %1521 = vrsqrt.f32 %v1086_v14 }
 0x5c9   : > { %v1522_v15 = vpop.eup %1521 }
 0x5ca   : > { %v1088_v16 = vmul.f32 %v1522_v15, %v1080_v9 }
 0x5cc   : > { %v1095_v18 = vmul.f32 %v1371_v6, %v1088_v16 }
 0x5ce   : > { %v1102_v19 = vadd.f32 %v1372_v17, %v1095_v18 }
 0x5d0   : > { %1103 = vst.msk [vmem:[%s684_s30] sm:$0xff] %vm713_vm1, %v1102_v19 }
 0x5d1 PF: > { %s1993_s25 = sld [smem:[#allocation8_spill]]  ;;  %s1127_s26 = sshll.u32 %s636_s15, 4  ;;  %s1128_s26 = int_to_ptr.vmem [resolvable:$true] %s1127_s26 }
 0x5d2   : > { %s1995_s2 = sld [smem:[#allocation20_spill]]  ;;  %s1109_s18 = scalar_lea.sflag [#allocation4], %s634_s16 }
 0x5d3   : > { %s1523_s20 = scalar_lea.vmem %s1128_s26, 128  ;;  %s1619_s30 = smov [#allocation3]  }
 0x5d4   : > { %p1524_p4 = scmp.ne.s32.totalorder %s1128_s26, %s1523_s20  ;;  %s1527_s22 = sshll.u32 %s1619_s30, 4  ;;  %s1528_s22 = int_to_ptr.vmem [resolvable:$false] %s1527_s22 }
 0x5d5   : > { %p1530_p7 = scmp.lt.s32.totalorder %s1128_s26, %s1528_s22 }
 0x5d6   : > { %p1525_p5 = pnand %p1524_p4, %p1751_p3 }
 0x5d7   : > { %s1374_s29 = sshll.u32 %s1993_s25, 2  ;;  %s1529_s25 = scalar_lea.vmem %s1528_s22, 256 }
 0x5d8   : > { %s1123_s27 = sadd.s32 %s1599_s21, %s1374_s29  ;;  %p1526_p6 = pneg %p1525_p5 }
 0x5d9   : > { %s1375_s23 = sshll.u32 %s1123_s27, 7  ;;  %p1531_p9 = scmp.lt.s32.totalorder %s1529_s25, %s1523_s20 }
 0x5da   : > { %s1125_s4 = scalar_lea.hbm %s1995_s2, %s1375_s23 }
 0x5db   : > { %p1532_p10 = por %p1531_p9, %p1530_p7 }
 0x5dd   : > { %p1533_p11 = pnand %p1532_p10, %p1526_p6 }
 0x5df   : > { %1536 = shalt.err (!%p1533_p11)
}
 0x5e0   : > { %s1537_s21 = scalar_lea.hbm %s1125_s4, 128  ;;  %s1541_s15 = scalar_lea.hbm %s1995_s2, 1024 }
 0x5e1   : > { %p1538_p12 = scmp.ne.s32.totalorder %s1125_s4, %s1537_s21  ;;  %p1542_p1 = scmp.lt.s32.totalorder %s1125_s4, %s1995_s2 }
 0x5e2   : > { %p1543_p2 = scmp.lt.s32.totalorder %s1541_s15, %s1537_s21 }
 0x5e3   : > { %p1539_p13 = pnand %p1538_p12, %p1751_p3 }
 0x5e4   : > { %p1544_p4 = por %p1543_p2, %p1542_p1 }
 0x5e5   : > { %p1540_p0 = pneg %p1539_p13 }
 0x5e7   : > { %p1545_p5 = pnand %p1544_p4, %p1540_p0 }
 0x5e9   : > { %1548 = shalt.err (!%p1545_p5)
}
 0x5ea   : > { %1438 = dma.vmem_to_hbm [thread:$0]  (%p1751_p3), %s1128_s26, 128, %s1125_s4, %s1109_s18  }
 0x5eb PF: > { %s1996_s23 = sld [smem:[#allocation11_spill]] }
 0x5ec   : > { %s1997_s24 = sld [smem:[#allocation6_spill]] }
 0x5f1   : > { %p1444_p6 = scmp.ge.s32.totalorder %s1996_s23, 2 }
 0x5f2   : > { %s1146_s20 = sand.u32 1, %s1997_s24  }
 0x5f3   : > { %p1441_p7 = pnand %p1444_p6, %p1760_p8  ;;  %s1147_s30 = scalar_lea.sflag [#allocation4], %s1146_s20 }
 0x5f5   : > { %p1442_p9 = pneg %p1441_p7 }
 0x5f7   : > { %1582 = dma.done.wait (%p1442_p9), %s1147_s30, 128  }
 0x5f8   : > { %1584 = vsyncadd (%p1442_p9), %s1147_s30, 4294967168  ;;  %s29_s25 = sadd.s32 1, %s1996_s23   ;;  %s1999_s22 = sld [smem:[#allocation7_spill]] }
 0x5f9   : > { %p26_p10 = scmp.ge.s32.totalorder %s29_s25, 10   ;;  %s2000_s20 = sld [smem:[#allocation16_spill]] }
 0x5fa   : > { %s2001_s21 = sld [smem:[#allocation9_spill]]  ;;  %s2005_s18 = smov %s1591_s19 }
 0x5fb   : > { %s2002_s28 = sld [smem:[#allocation10_spill]] }
 0x5fc   : > { %s2003_s23 = sld [smem:[#allocation12_spill]] }
 0x5fd   : > { %s2004_s24 = sld [smem:[#allocation14_spill]]  ;;  %28 = sbr.rel (!%p26_p10) target bundleno = 10 (0xa), region = 165 }
 0x5fe   : > { %s2006_s19 = smov %s1999_s22 }
 0x601   : > { %s2007_s22 = smov %s2002_s28 }
 0x602   :  { %1152 = vsyncpa [#allocation4], 1 }
 0x603   :  { %1154 = vsyncpa [#allocation4 + $0x1], 1 }

</bundles_post_ra>
